<compile_context>
chip_gen: v7x
topology: tpu7x:2x2x1
jax: 0.10.0
libtpu: 0.0.40
codegen_flags: <defaults>
</compile_context>

<pallas_src>
import numpy as np
import jax
import jax.numpy as jnp
from jax.experimental import pallas as pl
from jax.experimental.pallas import tpu as pltpu

OUT_PAD = 128    # lane-dense padded output width (sliced back to out_dim outside)
TB_MAX = 256     # max batch rows per grid step (full MXU row tile on v6e/v7x)


def _round_up(a, m):
    return ((a + m - 1) // m) * m


# ---------------------------------------------------------------------------
# Pallas kernel: conv1 -> ReLU -> conv2 -> ReLU -> fc1 (no ReLU, quirk) -> fc2
# Activations are position-major: rows ordered (l, b) so conv taps and the fc1
# contraction are static, sublane-aligned slices / single MXU dots.
# ---------------------------------------------------------------------------
def _tcnn_kernel(x_ref, w1_ref, b1_ref, w2_ref, b2_ref,
                 fc1w_ref, fc1b_ref, fc2w_ref, fc2b_ref, o_ref):
    L1, tb, _ = x_ref.shape
    KF, F = w2_ref.shape
    K = KF // F                      # static (trace-time) kernel size
    L2 = L1 - (K - 1)

    # --- conv1: im2col done in the wrapper -> single dot, contraction K*C_in
    x0 = x_ref[...].reshape(L1 * tb, -1)                       # bf16 rows
    a1 = jnp.dot(x0, w1_ref[...], preferred_element_type=jnp.float32)
    a1 = jnp.maximum(a1 + b1_ref[...], 0.0).astype(jnp.bfloat16)   # (L1*tb, F)

    # --- conv2: fold the K taps into one matmul by lane-concatenating the K
    # shifted, sublane-aligned row slices -> contraction K*F (fills the deep
    # MXU K dimension on v6e/v7x).
    if K == 1:
        c2_in = a1
    else:
        c2_in = jnp.concatenate(
            [a1[k * tb:(k + L2) * tb, :] for k in range(K)], axis=1)  # (L2*tb, K*F)
    a2 = jnp.dot(c2_in, w2_ref[...], preferred_element_type=jnp.float32)
    a2 = jnp.maximum(a2 + b2_ref[...], 0.0).astype(jnp.bfloat16)      # (L2*tb, F)

    # --- fc1: accumulate per-position dots into ONE (tb, dim_fc) f32 tile
    # (no flatten, no (L, tb, D) temporary; MRB accumulates in place on v7x).
    # NOTE: no ReLU here -- nn.Linear(d_in, dim_fc, nn.ReLU()) bias-arg quirk.
    act3 = a2.reshape(L2, tb, F)                                      # layout-preserving
    h = jnp.dot(act3[0], fc1w_ref[0], preferred_element_type=jnp.float32)
    for l in range(1, L2):                                            # static unroll
        h = h + jnp.dot(act3[l], fc1w_ref[l],
                        preferred_element_type=jnp.float32)
    h = h + fc1b_ref[...]                                             # (tb, dim_fc) f32

    # --- fc2: lane-dense padded output, stored as bf16 (unmasked vst)
    out = jnp.dot(h.astype(jnp.bfloat16), fc2w_ref[...],
                  preferred_element_type=jnp.float32) + fc2b_ref[...]
    o_ref[...] = out.astype(o_ref.dtype)


# ---------------------------------------------------------------------------
# Wrapper: parameter / input re-layout (plain JAX glue, done once at trace time)
# ---------------------------------------------------------------------------
def tcnn_1d_forward(x, params, *, kernel_size, n_convolutions, tb_max=TB_MAX):
    assert n_convolutions == 2, "kernel implements exactly two conv layers"
    B, win_size, input_dim = x.shape
    K = kernel_size
    w1, b1 = params["w1"], params["b1"]               # (F, C_in, K), (F,)
    w2, b2 = params["w2"], params["b2"]               # (F, F, K),   (F,)
    fc1_w, fc1_b = params["fc1_w"], params["fc1_b"]   # (dim_fc, d_in), (dim_fc,)
    fc2_w, fc2_b = params["fc2_w"], params["fc2_b"]   # (out, dim_fc),  (out,)

    F = w1.shape[0]
    dim_fc = fc1_w.shape[0]
    out_dim = fc2_w.shape[0]
    L1 = win_size - (K - 1)
    L2 = win_size - n_convolutions * (K - 1)

    # Adaptive batch tile: multiple of 16 (bf16 sublane packing), capped at
    # tb_max, and chosen so the grid has >=2 steps whenever B > 16 (v7x TCs).
    tb = max(16, min(tb_max, _round_up(-(-B // 2), 16)))
    B_pad = _round_up(B, tb)

    # input: pad batch, im2col over taps, go position-major, cast to bf16
    x_p = jnp.pad(x, ((0, B_pad - B), (0, 0), (0, 0)))
    if K == 1:
        x_unf = x_p                                               # (B_pad, L1, C)
    else:
        x_unf = jnp.concatenate([x_p[:, k:k + L1, :] for k in range(K)],
                                axis=-1)                          # (B_pad, L1, K*C)
    x_k = jnp.transpose(x_unf, (1, 0, 2)).astype(jnp.bfloat16)    # (L1, B_pad, K*C)

    # conv weights flattened so the contraction matches the im2col / tap-fold
    # ordering: index k*C + c on the contraction axis.
    w1_k = jnp.transpose(w1, (2, 1, 0)).reshape(K * input_dim, F).astype(jnp.bfloat16)
    w2_k = jnp.transpose(w2, (2, 1, 0)).reshape(K * F, F).astype(jnp.bfloat16)
    b1_k = b1.reshape(1, F).astype(jnp.float32)
    b2_k = b2.reshape(1, F).astype(jnp.float32)

    # fc1 weight as (L2, F, dim_fc): fc1w3[l, f, d] = fc1_w[d, f*L2 + l]
    # (matches PyTorch's (B, F, L2).view(B, -1) column ordering)
    fc1w_k = jnp.transpose(fc1_w.reshape(dim_fc, F, L2),
                           (2, 1, 0)).astype(jnp.bfloat16)
    fc1b_k = fc1_b.reshape(1, dim_fc).astype(jnp.float32)

    # fc2 weight / bias padded to a lane-dense 128-wide output
    fc2w_k = jnp.zeros((dim_fc, OUT_PAD), jnp.bfloat16).at[:, :out_dim].set(
        fc2_w.T.astype(jnp.bfloat16))
    fc2b_k = jnp.zeros((1, OUT_PAD), jnp.float32).at[:, :out_dim].set(
        fc2_b.astype(jnp.float32))

    operands = (x_k, w1_k, b1_k, w2_k, b2_k, fc1w_k, fc1b_k, fc2w_k, fc2b_k)

    flops = 2 * B_pad * (L1 * (K * input_dim) * F
                         + L2 * (K * F) * F
                         + L2 * F * dim_fc
                         + dim_fc * OUT_PAD)
    bytes_accessed = (sum(int(np.prod(a.shape)) * a.dtype.itemsize
                          for a in operands)
                      + B_pad * OUT_PAD * 2)

    out_padded = pl.pallas_call(
        _tcnn_kernel,
        out_shape=jax.ShapeDtypeStruct((B_pad, OUT_PAD), jnp.bfloat16),
        grid=(B_pad // tb,),
        in_specs=[
            pl.BlockSpec((L1, tb, K * input_dim), lambda i: (0, i, 0)),  # x (im2col)
            pl.BlockSpec(w1_k.shape, lambda i: (0, 0)),                  # w1
            pl.BlockSpec(b1_k.shape, lambda i: (0, 0)),                  # b1
            pl.BlockSpec(w2_k.shape, lambda i: (0, 0)),                  # w2
            pl.BlockSpec(b2_k.shape, lambda i: (0, 0)),                  # b2
            pl.BlockSpec(fc1w_k.shape, lambda i: (0, 0, 0)),             # fc1w
            pl.BlockSpec(fc1b_k.shape, lambda i: (0, 0)),                # fc1b
            pl.BlockSpec(fc2w_k.shape, lambda i: (0, 0)),                # fc2w
            pl.BlockSpec(fc2b_k.shape, lambda i: (0, 0)),                # fc2b
        ],
        out_specs=pl.BlockSpec((tb, OUT_PAD), lambda i: (i, 0)),
        compiler_params=pltpu.CompilerParams(
            dimension_semantics=("parallel",)),      # shards batch over TCs (v7x)
        cost_estimate=pl.CostEstimate(
            flops=flops, transcendentals=0, bytes_accessed=bytes_accessed),
    )(*operands)

    return out_padded[:B, :out_dim]


# ---------------------------------------------------------------------------
# Pure-JAX reference mirroring the PyTorch forward (NCL conv, flatten, fc1/fc2)
# in the same mixed precision as the kernel: bf16 MXU inputs, f32 accumulation.
# ---------------------------------------------------------------------------
def tcnn_1d_reference(x, params):
    def mm(a, b):
        return jnp.dot(a.astype(jnp.bfloat16), b.astype(jnp.bfloat16),
                       preferred_element_type=jnp.float32)

    t = jnp.transpose(x, (0, 2, 1))                  # (B, C, L), like PyTorch
    for w, b in ((params["w1"], params["b1"]), (params["w2"], params["b2"])):
        Fo, Ci, K = w.shape
        L = t.shape[2]
        L_out = L - (K - 1)
        out = jnp.zeros((t.shape[0], Fo, L_out), jnp.float32)
        for k in range(K):
            out = out + jnp.einsum("bcl,fc->bfl",
                                   t[:, :, k:k + L_out].astype(jnp.bfloat16),
                                   w[:, :, k].astype(jnp.bfloat16),
                                   preferred_element_type=jnp.float32)
        t = jax.nn.relu(out + b[None, :, None])
    flat = t.reshape(t.shape[0], -1)                 # PyTorch .view(B, -1)
    h = mm(flat, params["fc1_w"].T) + params["fc1_b"]   # no ReLU (bias-arg quirk)
    return mm(h, params["fc2_w"].T) + params["fc2_b"]


# ---------------------------------------------------------------------------
# Deterministic parameter init (xavier_uniform for dim>1, as in __init__)
# ---------------------------------------------------------------------------
def _xavier(key, shape, fan_in, fan_out):
    a = float(np.sqrt(6.0 / (fan_in + fan_out)))
    return jax.random.uniform(key, shape, jnp.float32, -a, a)


def init_params(key, input_dim, output_dim, win_size,
                n_filters, kernel_size, n_convolutions, dim_fc):
    keys = jax.random.split(key, 8)
    F, K = n_filters, kernel_size
    d_in = n_filters * (win_size - n_convolutions * (K - 1))
    p = {}
    p["w1"] = _xavier(keys[0], (F, input_dim, K), input_dim * K, F * K)
    p["b1"] = jax.random.uniform(keys[1], (F,), jnp.float32, -0.1, 0.1)
    p["w2"] = _xavier(keys[2], (F, F, K), F * K, F * K)
    p["b2"] = jax.random.uniform(keys[3], (F,), jnp.float32, -0.1, 0.1)
    p["fc1_w"] = _xavier(keys[4], (dim_fc, d_in), d_in, dim_fc)
    p["fc1_b"] = jax.random.uniform(keys[5], (dim_fc,), jnp.float32, -0.1, 0.1)
    p["fc2_w"] = _xavier(keys[6], (output_dim, dim_fc), dim_fc, output_dim)
    p["fc2_b"] = jax.random.uniform(keys[7], (output_dim,), jnp.float32, -0.1, 0.1)
    return p


if __name__ == "__main__":
    B = 2
    input_dim = 4
    win_size = 16
    output_dim = 8
    n_filters = 64
    dim_fc = 128
    n_convolutions = 2

    key = jax.random.PRNGKey(0)
    k_x, k_p1, k_p2 = jax.random.split(key, 3)
    x = jax.random.normal(k_x, (B, win_size, input_dim), jnp.float32)

    # config 1: module defaults (kernel_size=1) ; config 2: exercises K>1 taps
    for kernel_size, k_p in ((1, k_p1), (3, k_p2)):
        params = init_params(k_p, input_dim, output_dim, win_size,
                             n_filters, kernel_size, n_convolutions, dim_fc)
        out = tcnn_1d_forward(x, params, kernel_size=kernel_size,
                              n_convolutions=n_convolutions)
        out = jax.block_until_ready(out)
        ref = jax.block_until_ready(tcnn_1d_reference(x, params))
        # tolerance widened slightly: the kernel stores bf16 (<= 1 ULP ~ 0.4% rel)
        np.testing.assert_allclose(np.asarray(out.astype(jnp.float32)),
                                   np.asarray(ref),
                                   rtol=1e-2, atol=1e-2)

    print("KERNEL_OK")
</pallas_src>

<mosaic_0001>
module attributes {stable_mosaic.version = 11 : i64} {
  func.func @_tcnn_kernel(%arg0: i32, %arg1: memref<16x16x4xbf16, #tpu.memory_space<vmem>>, %arg2: memref<4x64xbf16, #tpu.memory_space<vmem>>, %arg3: memref<1x64xf32, #tpu.memory_space<vmem>>, %arg4: memref<64x64xbf16, #tpu.memory_space<vmem>>, %arg5: memref<1x64xf32, #tpu.memory_space<vmem>>, %arg6: memref<16x64x128xbf16, #tpu.memory_space<vmem>>, %arg7: memref<1x128xf32, #tpu.memory_space<vmem>>, %arg8: memref<128x128xbf16, #tpu.memory_space<vmem>>, %arg9: memref<1x128xf32, #tpu.memory_space<vmem>>, %arg10: memref<16x128xbf16, #tpu.memory_space<vmem>>) attributes {dimension_semantics = [#tpu.dimension_semantics<parallel>], iteration_bounds = array<i64: 1>, scalar_prefetch = 0 : i64, scratch_operands = 0 : i64, tpu.core_type = #tpu.core_type<tc>, window_params = [{transform_indices = @transform_0, window_bounds = array<i64: 16, 16, 4>}, {pipeline_mode = #tpu.pipeline_mode<synchronous>, transform_indices = @transform_1, window_bounds = array<i64: 4, 64>}, {pipeline_mode = #tpu.pipeline_mode<synchronous>, transform_indices = @transform_2, window_bounds = array<i64: 1, 64>}, {pipeline_mode = #tpu.pipeline_mode<synchronous>, transform_indices = @transform_3, window_bounds = array<i64: 64, 64>}, {pipeline_mode = #tpu.pipeline_mode<synchronous>, transform_indices = @transform_4, window_bounds = array<i64: 1, 64>}, {pipeline_mode = #tpu.pipeline_mode<synchronous>, transform_indices = @transform_5, window_bounds = array<i64: 16, 64, 128>}, {pipeline_mode = #tpu.pipeline_mode<synchronous>, transform_indices = @transform_6, window_bounds = array<i64: 1, 128>}, {pipeline_mode = #tpu.pipeline_mode<synchronous>, transform_indices = @transform_7, window_bounds = array<i64: 128, 128>}, {pipeline_mode = #tpu.pipeline_mode<synchronous>, transform_indices = @transform_8, window_bounds = array<i64: 1, 128>}, {transform_indices = @transform_9, window_bounds = array<i64: 16, 128>}]} {
    %c0 = arith.constant 0 : index
    %c0_0 = arith.constant 0 : index
    %c0_1 = arith.constant 0 : index
    %0 = vector.load %arg1[%c0, %c0_0, %c0_1] : memref<16x16x4xbf16, #tpu.memory_space<vmem>>, vector<16x16x4xbf16>
    %1 = vector.shape_cast %0 : vector<16x16x4xbf16> to vector<256x4xbf16>
    %c0_2 = arith.constant 0 : index
    %c0_3 = arith.constant 0 : index
    %2 = vector.load %arg2[%c0_2, %c0_3] : memref<4x64xbf16, #tpu.memory_space<vmem>>, vector<4x64xbf16>
    %cst = arith.constant dense<0.000000e+00> : vector<256x64xf32>
    %3 = tpu.matmul %1, %2, %cst {dimension_numbers = #tpu.dot_dimension_numbers<[1], [0], [0], [1], [0, 0, 1, 1], [], []>} : vector<256x4xbf16>, vector<4x64xbf16>, vector<256x64xf32> -> vector<256x64xf32>
    %c0_4 = arith.constant 0 : index
    %c0_5 = arith.constant 0 : index
    %4 = vector.load %arg3[%c0_4, %c0_5] : memref<1x64xf32, #tpu.memory_space<vmem>>, vector<1x64xf32>
    %5 = vector.broadcast %4 : vector<1x64xf32> to vector<256x64xf32>
    %6 = arith.addf %3, %5 : vector<256x64xf32>
    %cst_6 = arith.constant 0.000000e+00 : f32
    %7 = vector.broadcast %cst_6 : f32 to vector<256x64xf32>
    %8 = arith.maximumf %6, %7 : vector<256x64xf32>
    %9 = arith.truncf %8 : vector<256x64xf32> to vector<256x64xbf16>
    %c0_7 = arith.constant 0 : index
    %c0_8 = arith.constant 0 : index
    %10 = vector.load %arg4[%c0_7, %c0_8] : memref<64x64xbf16, #tpu.memory_space<vmem>>, vector<64x64xbf16>
    %cst_9 = arith.constant dense<0.000000e+00> : vector<256x64xf32>
    %11 = tpu.matmul %9, %10, %cst_9 {dimension_numbers = #tpu.dot_dimension_numbers<[1], [0], [0], [1], [0, 0, 1, 1], [], []>} : vector<256x64xbf16>, vector<64x64xbf16>, vector<256x64xf32> -> vector<256x64xf32>
    %c0_10 = arith.constant 0 : index
    %c0_11 = arith.constant 0 : index
    %12 = vector.load %arg5[%c0_10, %c0_11] : memref<1x64xf32, #tpu.memory_space<vmem>>, vector<1x64xf32>
    %13 = vector.broadcast %12 : vector<1x64xf32> to vector<256x64xf32>
    %14 = arith.addf %11, %13 : vector<256x64xf32>
    %cst_12 = arith.constant 0.000000e+00 : f32
    %15 = vector.broadcast %cst_12 : f32 to vector<256x64xf32>
    %16 = arith.maximumf %14, %15 : vector<256x64xf32>
    %17 = arith.truncf %16 : vector<256x64xf32> to vector<256x64xbf16>
    %18 = vector.shape_cast %17 : vector<256x64xbf16> to vector<16x16x64xbf16>
    %19 = vector.extract_strided_slice %18 {offsets = [0, 0, 0], sizes = [1, 16, 64], strides = [1, 1, 1]} : vector<16x16x64xbf16> to vector<1x16x64xbf16>
    %20 = vector.shape_cast %19 : vector<1x16x64xbf16> to vector<16x64xbf16>
    %c0_13 = arith.constant 0 : index
    %c0_14 = arith.constant 0 : index
    %c0_15 = arith.constant 0 : index
    %21 = vector.load %arg6[%c0_13, %c0_14, %c0_15] : memref<16x64x128xbf16, #tpu.memory_space<vmem>>, vector<1x64x128xbf16>
    %22 = vector.shape_cast %21 : vector<1x64x128xbf16> to vector<64x128xbf16>
    %cst_16 = arith.constant dense<0.000000e+00> : vector<16x128xf32>
    %23 = tpu.matmul %20, %22, %cst_16 {dimension_numbers = #tpu.dot_dimension_numbers<[1], [0], [0], [1], [0, 0, 1, 1], [], []>} : vector<16x64xbf16>, vector<64x128xbf16>, vector<16x128xf32> -> vector<16x128xf32>
    %24 = vector.extract_strided_slice %18 {offsets = [1, 0, 0], sizes = [1, 16, 64], strides = [1, 1, 1]} : vector<16x16x64xbf16> to vector<1x16x64xbf16>
    %25 = vector.shape_cast %24 : vector<1x16x64xbf16> to vector<16x64xbf16>
    %c1 = arith.constant 1 : index
    %c0_17 = arith.constant 0 : index
    %c0_18 = arith.constant 0 : index
    %26 = vector.load %arg6[%c1, %c0_17, %c0_18] : memref<16x64x128xbf16, #tpu.memory_space<vmem>>, vector<1x64x128xbf16>
    %27 = vector.shape_cast %26 : vector<1x64x128xbf16> to vector<64x128xbf16>
    %cst_19 = arith.constant dense<0.000000e+00> : vector<16x128xf32>
    %28 = tpu.matmul %25, %27, %cst_19 {dimension_numbers = #tpu.dot_dimension_numbers<[1], [0], [0], [1], [0, 0, 1, 1], [], []>} : vector<16x64xbf16>, vector<64x128xbf16>, vector<16x128xf32> -> vector<16x128xf32>
    %29 = arith.addf %23, %28 : vector<16x128xf32>
    %30 = vector.extract_strided_slice %18 {offsets = [2, 0, 0], sizes = [1, 16, 64], strides = [1, 1, 1]} : vector<16x16x64xbf16> to vector<1x16x64xbf16>
    %31 = vector.shape_cast %30 : vector<1x16x64xbf16> to vector<16x64xbf16>
    %c2 = arith.constant 2 : index
    %c0_20 = arith.constant 0 : index
    %c0_21 = arith.constant 0 : index
    %32 = vector.load %arg6[%c2, %c0_20, %c0_21] : memref<16x64x128xbf16, #tpu.memory_space<vmem>>, vector<1x64x128xbf16>
    %33 = vector.shape_cast %32 : vector<1x64x128xbf16> to vector<64x128xbf16>
    %cst_22 = arith.constant dense<0.000000e+00> : vector<16x128xf32>
    %34 = tpu.matmul %31, %33, %cst_22 {dimension_numbers = #tpu.dot_dimension_numbers<[1], [0], [0], [1], [0, 0, 1, 1], [], []>} : vector<16x64xbf16>, vector<64x128xbf16>, vector<16x128xf32> -> vector<16x128xf32>
    %35 = arith.addf %29, %34 : vector<16x128xf32>
    %36 = vector.extract_strided_slice %18 {offsets = [3, 0, 0], sizes = [1, 16, 64], strides = [1, 1, 1]} : vector<16x16x64xbf16> to vector<1x16x64xbf16>
    %37 = vector.shape_cast %36 : vector<1x16x64xbf16> to vector<16x64xbf16>
    %c3 = arith.constant 3 : index
    %c0_23 = arith.constant 0 : index
    %c0_24 = arith.constant 0 : index
    %38 = vector.load %arg6[%c3, %c0_23, %c0_24] : memref<16x64x128xbf16, #tpu.memory_space<vmem>>, vector<1x64x128xbf16>
    %39 = vector.shape_cast %38 : vector<1x64x128xbf16> to vector<64x128xbf16>
    %cst_25 = arith.constant dense<0.000000e+00> : vector<16x128xf32>
    %40 = tpu.matmul %37, %39, %cst_25 {dimension_numbers = #tpu.dot_dimension_numbers<[1], [0], [0], [1], [0, 0, 1, 1], [], []>} : vector<16x64xbf16>, vector<64x128xbf16>, vector<16x128xf32> -> vector<16x128xf32>
    %41 = arith.addf %35, %40 : vector<16x128xf32>
    %42 = vector.extract_strided_slice %18 {offsets = [4, 0, 0], sizes = [1, 16, 64], strides = [1, 1, 1]} : vector<16x16x64xbf16> to vector<1x16x64xbf16>
    %43 = vector.shape_cast %42 : vector<1x16x64xbf16> to vector<16x64xbf16>
    %c4 = arith.constant 4 : index
    %c0_26 = arith.constant 0 : index
    %c0_27 = arith.constant 0 : index
    %44 = vector.load %arg6[%c4, %c0_26, %c0_27] : memref<16x64x128xbf16, #tpu.memory_space<vmem>>, vector<1x64x128xbf16>
    %45 = vector.shape_cast %44 : vector<1x64x128xbf16> to vector<64x128xbf16>
    %cst_28 = arith.constant dense<0.000000e+00> : vector<16x128xf32>
    %46 = tpu.matmul %43, %45, %cst_28 {dimension_numbers = #tpu.dot_dimension_numbers<[1], [0], [0], [1], [0, 0, 1, 1], [], []>} : vector<16x64xbf16>, vector<64x128xbf16>, vector<16x128xf32> -> vector<16x128xf32>
    %47 = arith.addf %41, %46 : vector<16x128xf32>
    %48 = vector.extract_strided_slice %18 {offsets = [5, 0, 0], sizes = [1, 16, 64], strides = [1, 1, 1]} : vector<16x16x64xbf16> to vector<1x16x64xbf16>
    %49 = vector.shape_cast %48 : vector<1x16x64xbf16> to vector<16x64xbf16>
    %c5 = arith.constant 5 : index
    %c0_29 = arith.constant 0 : index
    %c0_30 = arith.constant 0 : index
    %50 = vector.load %arg6[%c5, %c0_29, %c0_30] : memref<16x64x128xbf16, #tpu.memory_space<vmem>>, vector<1x64x128xbf16>
    %51 = vector.shape_cast %50 : vector<1x64x128xbf16> to vector<64x128xbf16>
    %cst_31 = arith.constant dense<0.000000e+00> : vector<16x128xf32>
    %52 = tpu.matmul %49, %51, %cst_31 {dimension_numbers = #tpu.dot_dimension_numbers<[1], [0], [0], [1], [0, 0, 1, 1], [], []>} : vector<16x64xbf16>, vector<64x128xbf16>, vector<16x128xf32> -> vector<16x128xf32>
    %53 = arith.addf %47, %52 : vector<16x128xf32>
    %54 = vector.extract_strided_slice %18 {offsets = [6, 0, 0], sizes = [1, 16, 64], strides = [1, 1, 1]} : vector<16x16x64xbf16> to vector<1x16x64xbf16>
    %55 = vector.shape_cast %54 : vector<1x16x64xbf16> to vector<16x64xbf16>
    %c6 = arith.constant 6 : index
    %c0_32 = arith.constant 0 : index
    %c0_33 = arith.constant 0 : index
    %56 = vector.load %arg6[%c6, %c0_32, %c0_33] : memref<16x64x128xbf16, #tpu.memory_space<vmem>>, vector<1x64x128xbf16>
    %57 = vector.shape_cast %56 : vector<1x64x128xbf16> to vector<64x128xbf16>
    %cst_34 = arith.constant dense<0.000000e+00> : vector<16x128xf32>
    %58 = tpu.matmul %55, %57, %cst_34 {dimension_numbers = #tpu.dot_dimension_numbers<[1], [0], [0], [1], [0, 0, 1, 1], [], []>} : vector<16x64xbf16>, vector<64x128xbf16>, vector<16x128xf32> -> vector<16x128xf32>
    %59 = arith.addf %53, %58 : vector<16x128xf32>
    %60 = vector.extract_strided_slice %18 {offsets = [7, 0, 0], sizes = [1, 16, 64], strides = [1, 1, 1]} : vector<16x16x64xbf16> to vector<1x16x64xbf16>
    %61 = vector.shape_cast %60 : vector<1x16x64xbf16> to vector<16x64xbf16>
    %c7 = arith.constant 7 : index
    %c0_35 = arith.constant 0 : index
    %c0_36 = arith.constant 0 : index
    %62 = vector.load %arg6[%c7, %c0_35, %c0_36] : memref<16x64x128xbf16, #tpu.memory_space<vmem>>, vector<1x64x128xbf16>
    %63 = vector.shape_cast %62 : vector<1x64x128xbf16> to vector<64x128xbf16>
    %cst_37 = arith.constant dense<0.000000e+00> : vector<16x128xf32>
    %64 = tpu.matmul %61, %63, %cst_37 {dimension_numbers = #tpu.dot_dimension_numbers<[1], [0], [0], [1], [0, 0, 1, 1], [], []>} : vector<16x64xbf16>, vector<64x128xbf16>, vector<16x128xf32> -> vector<16x128xf32>
    %65 = arith.addf %59, %64 : vector<16x128xf32>
    %66 = vector.extract_strided_slice %18 {offsets = [8, 0, 0], sizes = [1, 16, 64], strides = [1, 1, 1]} : vector<16x16x64xbf16> to vector<1x16x64xbf16>
    %67 = vector.shape_cast %66 : vector<1x16x64xbf16> to vector<16x64xbf16>
    %c8 = arith.constant 8 : index
    %c0_38 = arith.constant 0 : index
    %c0_39 = arith.constant 0 : index
    %68 = vector.load %arg6[%c8, %c0_38, %c0_39] : memref<16x64x128xbf16, #tpu.memory_space<vmem>>, vector<1x64x128xbf16>
    %69 = vector.shape_cast %68 : vector<1x64x128xbf16> to vector<64x128xbf16>
    %cst_40 = arith.constant dense<0.000000e+00> : vector<16x128xf32>
    %70 = tpu.matmul %67, %69, %cst_40 {dimension_numbers = #tpu.dot_dimension_numbers<[1], [0], [0], [1], [0, 0, 1, 1], [], []>} : vector<16x64xbf16>, vector<64x128xbf16>, vector<16x128xf32> -> vector<16x128xf32>
    %71 = arith.addf %65, %70 : vector<16x128xf32>
    %72 = vector.extract_strided_slice %18 {offsets = [9, 0, 0], sizes = [1, 16, 64], strides = [1, 1, 1]} : vector<16x16x64xbf16> to vector<1x16x64xbf16>
    %73 = vector.shape_cast %72 : vector<1x16x64xbf16> to vector<16x64xbf16>
    %c9 = arith.constant 9 : index
    %c0_41 = arith.constant 0 : index
    %c0_42 = arith.constant 0 : index
    %74 = vector.load %arg6[%c9, %c0_41, %c0_42] : memref<16x64x128xbf16, #tpu.memory_space<vmem>>, vector<1x64x128xbf16>
    %75 = vector.shape_cast %74 : vector<1x64x128xbf16> to vector<64x128xbf16>
    %cst_43 = arith.constant dense<0.000000e+00> : vector<16x128xf32>
    %76 = tpu.matmul %73, %75, %cst_43 {dimension_numbers = #tpu.dot_dimension_numbers<[1], [0], [0], [1], [0, 0, 1, 1], [], []>} : vector<16x64xbf16>, vector<64x128xbf16>, vector<16x128xf32> -> vector<16x128xf32>
    %77 = arith.addf %71, %76 : vector<16x128xf32>
    %78 = vector.extract_strided_slice %18 {offsets = [10, 0, 0], sizes = [1, 16, 64], strides = [1, 1, 1]} : vector<16x16x64xbf16> to vector<1x16x64xbf16>
    %79 = vector.shape_cast %78 : vector<1x16x64xbf16> to vector<16x64xbf16>
    %c10 = arith.constant 10 : index
    %c0_44 = arith.constant 0 : index
    %c0_45 = arith.constant 0 : index
    %80 = vector.load %arg6[%c10, %c0_44, %c0_45] : memref<16x64x128xbf16, #tpu.memory_space<vmem>>, vector<1x64x128xbf16>
    %81 = vector.shape_cast %80 : vector<1x64x128xbf16> to vector<64x128xbf16>
    %cst_46 = arith.constant dense<0.000000e+00> : vector<16x128xf32>
    %82 = tpu.matmul %79, %81, %cst_46 {dimension_numbers = #tpu.dot_dimension_numbers<[1], [0], [0], [1], [0, 0, 1, 1], [], []>} : vector<16x64xbf16>, vector<64x128xbf16>, vector<16x128xf32> -> vector<16x128xf32>
    %83 = arith.addf %77, %82 : vector<16x128xf32>
    %84 = vector.extract_strided_slice %18 {offsets = [11, 0, 0], sizes = [1, 16, 64], strides = [1, 1, 1]} : vector<16x16x64xbf16> to vector<1x16x64xbf16>
    %85 = vector.shape_cast %84 : vector<1x16x64xbf16> to vector<16x64xbf16>
    %c11 = arith.constant 11 : index
    %c0_47 = arith.constant 0 : index
    %c0_48 = arith.constant 0 : index
    %86 = vector.load %arg6[%c11, %c0_47, %c0_48] : memref<16x64x128xbf16, #tpu.memory_space<vmem>>, vector<1x64x128xbf16>
    %87 = vector.shape_cast %86 : vector<1x64x128xbf16> to vector<64x128xbf16>
    %cst_49 = arith.constant dense<0.000000e+00> : vector<16x128xf32>
    %88 = tpu.matmul %85, %87, %cst_49 {dimension_numbers = #tpu.dot_dimension_numbers<[1], [0], [0], [1], [0, 0, 1, 1], [], []>} : vector<16x64xbf16>, vector<64x128xbf16>, vector<16x128xf32> -> vector<16x128xf32>
    %89 = arith.addf %83, %88 : vector<16x128xf32>
    %90 = vector.extract_strided_slice %18 {offsets = [12, 0, 0], sizes = [1, 16, 64], strides = [1, 1, 1]} : vector<16x16x64xbf16> to vector<1x16x64xbf16>
    %91 = vector.shape_cast %90 : vector<1x16x64xbf16> to vector<16x64xbf16>
    %c12 = arith.constant 12 : index
    %c0_50 = arith.constant 0 : index
    %c0_51 = arith.constant 0 : index
    %92 = vector.load %arg6[%c12, %c0_50, %c0_51] : memref<16x64x128xbf16, #tpu.memory_space<vmem>>, vector<1x64x128xbf16>
    %93 = vector.shape_cast %92 : vector<1x64x128xbf16> to vector<64x128xbf16>
    %cst_52 = arith.constant dense<0.000000e+00> : vector<16x128xf32>
    %94 = tpu.matmul %91, %93, %cst_52 {dimension_numbers = #tpu.dot_dimension_numbers<[1], [0], [0], [1], [0, 0, 1, 1], [], []>} : vector<16x64xbf16>, vector<64x128xbf16>, vector<16x128xf32> -> vector<16x128xf32>
    %95 = arith.addf %89, %94 : vector<16x128xf32>
    %96 = vector.extract_strided_slice %18 {offsets = [13, 0, 0], sizes = [1, 16, 64], strides = [1, 1, 1]} : vector<16x16x64xbf16> to vector<1x16x64xbf16>
    %97 = vector.shape_cast %96 : vector<1x16x64xbf16> to vector<16x64xbf16>
    %c13 = arith.constant 13 : index
    %c0_53 = arith.constant 0 : index
    %c0_54 = arith.constant 0 : index
    %98 = vector.load %arg6[%c13, %c0_53, %c0_54] : memref<16x64x128xbf16, #tpu.memory_space<vmem>>, vector<1x64x128xbf16>
    %99 = vector.shape_cast %98 : vector<1x64x128xbf16> to vector<64x128xbf16>
    %cst_55 = arith.constant dense<0.000000e+00> : vector<16x128xf32>
    %100 = tpu.matmul %97, %99, %cst_55 {dimension_numbers = #tpu.dot_dimension_numbers<[1], [0], [0], [1], [0, 0, 1, 1], [], []>} : vector<16x64xbf16>, vector<64x128xbf16>, vector<16x128xf32> -> vector<16x128xf32>
    %101 = arith.addf %95, %100 : vector<16x128xf32>
    %102 = vector.extract_strided_slice %18 {offsets = [14, 0, 0], sizes = [1, 16, 64], strides = [1, 1, 1]} : vector<16x16x64xbf16> to vector<1x16x64xbf16>
    %103 = vector.shape_cast %102 : vector<1x16x64xbf16> to vector<16x64xbf16>
    %c14 = arith.constant 14 : index
    %c0_56 = arith.constant 0 : index
    %c0_57 = arith.constant 0 : index
    %104 = vector.load %arg6[%c14, %c0_56, %c0_57] : memref<16x64x128xbf16, #tpu.memory_space<vmem>>, vector<1x64x128xbf16>
    %105 = vector.shape_cast %104 : vector<1x64x128xbf16> to vector<64x128xbf16>
    %cst_58 = arith.constant dense<0.000000e+00> : vector<16x128xf32>
    %106 = tpu.matmul %103, %105, %cst_58 {dimension_numbers = #tpu.dot_dimension_numbers<[1], [0], [0], [1], [0, 0, 1, 1], [], []>} : vector<16x64xbf16>, vector<64x128xbf16>, vector<16x128xf32> -> vector<16x128xf32>
    %107 = arith.addf %101, %106 : vector<16x128xf32>
    %108 = vector.extract_strided_slice %18 {offsets = [15, 0, 0], sizes = [1, 16, 64], strides = [1, 1, 1]} : vector<16x16x64xbf16> to vector<1x16x64xbf16>
    %109 = vector.shape_cast %108 : vector<1x16x64xbf16> to vector<16x64xbf16>
    %c15 = arith.constant 15 : index
    %c0_59 = arith.constant 0 : index
    %c0_60 = arith.constant 0 : index
    %110 = vector.load %arg6[%c15, %c0_59, %c0_60] : memref<16x64x128xbf16, #tpu.memory_space<vmem>>, vector<1x64x128xbf16>
    %111 = vector.shape_cast %110 : vector<1x64x128xbf16> to vector<64x128xbf16>
    %cst_61 = arith.constant dense<0.000000e+00> : vector<16x128xf32>
    %112 = tpu.matmul %109, %111, %cst_61 {dimension_numbers = #tpu.dot_dimension_numbers<[1], [0], [0], [1], [0, 0, 1, 1], [], []>} : vector<16x64xbf16>, vector<64x128xbf16>, vector<16x128xf32> -> vector<16x128xf32>
    %113 = arith.addf %107, %112 : vector<16x128xf32>
    %c0_62 = arith.constant 0 : index
    %c0_63 = arith.constant 0 : index
    %114 = vector.load %arg7[%c0_62, %c0_63] : memref<1x128xf32, #tpu.memory_space<vmem>>, vector<1x128xf32>
    %115 = vector.broadcast %114 : vector<1x128xf32> to vector<16x128xf32>
    %116 = arith.addf %113, %115 : vector<16x128xf32>
    %117 = arith.truncf %116 : vector<16x128xf32> to vector<16x128xbf16>
    %c0_64 = arith.constant 0 : index
    %c0_65 = arith.constant 0 : index
    %118 = vector.load %arg8[%c0_64, %c0_65] : memref<128x128xbf16, #tpu.memory_space<vmem>>, vector<128x128xbf16>
    %cst_66 = arith.constant dense<0.000000e+00> : vector<16x128xf32>
    %119 = tpu.matmul %117, %118, %cst_66 {dimension_numbers = #tpu.dot_dimension_numbers<[1], [0], [0], [1], [0, 0, 1, 1], [], []>} : vector<16x128xbf16>, vector<128x128xbf16>, vector<16x128xf32> -> vector<16x128xf32>
    %c0_67 = arith.constant 0 : index
    %c0_68 = arith.constant 0 : index
    %120 = vector.load %arg9[%c0_67, %c0_68] : memref<1x128xf32, #tpu.memory_space<vmem>>, vector<1x128xf32>
    %121 = vector.broadcast %120 : vector<1x128xf32> to vector<16x128xf32>
    %122 = arith.addf %119, %121 : vector<16x128xf32>
    %123 = arith.truncf %122 : vector<16x128xf32> to vector<16x128xbf16>
    %c0_69 = arith.constant 0 : index
    %c0_70 = arith.constant 0 : index
    %124 = vector.load %arg10[%c0_69, %c0_70] : memref<16x128xbf16, #tpu.memory_space<vmem>>, vector<16x128xbf16>
    tpu.vector_store %arg10[%c0_69, %c0_70], %123 {strides = array<i32>} : memref<16x128xbf16, #tpu.memory_space<vmem>>, vector<16x128xbf16>,
    return
  }
  func.func @transform_0(%arg0: i32) -> (i32, i32, i32) {
    %c0_i32 = arith.constant 0 : i32
    %c0_i32_0 = arith.constant 0 : i32
    %c0_i32_1 = arith.constant 0 : i32
    return %c0_i32, %arg0, %c0_i32_0 : i32, i32, i32
  }
  func.func @transform_1(%arg0: i32) -> (i32, i32) {
    %c0_i32 = arith.constant 0 : i32
    %c0_i32_0 = arith.constant 0 : i32
    %c0_i32_1 = arith.constant 0 : i32
    return %c0_i32, %c0_i32_0 : i32, i32
  }
  func.func @transform_2(%arg0: i32) -> (i32, i32) {
    %c0_i32 = arith.constant 0 : i32
    %c0_i32_0 = arith.constant 0 : i32
    %c0_i32_1 = arith.constant 0 : i32
    return %c0_i32, %c0_i32_0 : i32, i32
  }
  func.func @transform_3(%arg0: i32) -> (i32, i32) {
    %c0_i32 = arith.constant 0 : i32
    %c0_i32_0 = arith.constant 0 : i32
    %c0_i32_1 = arith.constant 0 : i32
    return %c0_i32, %c0_i32_0 : i32, i32
  }
  func.func @transform_4(%arg0: i32) -> (i32, i32) {
    %c0_i32 = arith.constant 0 : i32
    %c0_i32_0 = arith.constant 0 : i32
    %c0_i32_1 = arith.constant 0 : i32
    return %c0_i32, %c0_i32_0 : i32, i32
  }
  func.func @transform_5(%arg0: i32) -> (i32, i32, i32) {
    %c0_i32 = arith.constant 0 : i32
    %c0_i32_0 = arith.constant 0 : i32
    %c0_i32_1 = arith.constant 0 : i32
    %c0_i32_2 = arith.constant 0 : i32
    return %c0_i32, %c0_i32_0, %c0_i32_1 : i32, i32, i32
  }
  func.func @transform_6(%arg0: i32) -> (i32, i32) {
    %c0_i32 = arith.constant 0 : i32
    %c0_i32_0 = arith.constant 0 : i32
    %c0_i32_1 = arith.constant 0 : i32
    return %c0_i32, %c0_i32_0 : i32, i32
  }
  func.func @transform_7(%arg0: i32) -> (i32, i32) {
    %c0_i32 = arith.constant 0 : i32
    %c0_i32_0 = arith.constant 0 : i32
    %c0_i32_1 = arith.constant 0 : i32
    return %c0_i32, %c0_i32_0 : i32, i32
  }
  func.func @transform_8(%arg0: i32) -> (i32, i32) {
    %c0_i32 = arith.constant 0 : i32
    %c0_i32_0 = arith.constant 0 : i32
    %c0_i32_1 = arith.constant 0 : i32
    return %c0_i32, %c0_i32_0 : i32, i32
  }
  func.func @transform_9(%arg0: i32) -> (i32, i32) {
    %c0_i32 = arith.constant 0 : i32
    %c0_i32_0 = arith.constant 0 : i32
    return %arg0, %c0_i32 : i32, i32
  }
}

</mosaic_0001>

<bundles_post_ra>
// kernel: tpu_custom_call.1
= control target key start
LH: loop header
LB: loop body
LE: loop exit
PB: predicated region body
PF: predicated region fallthrough
CT: control target
= control target key end

     0   :  { %14 = vsyncpa [#allocation3], 0  ;;  %s3296_s0 = inlined_call_operand.vmem [shape: bf16[16,16,4], index: 0, kind: input, shape index: {}]   ;;  %s3297_s1 = inlined_call_operand.vmem [shape: bf16[4,64], index: 1, kind: input, shape index: {}]   ;;  %s3298_s2 = inlined_call_operand.vmem [shape: f32[1,64], index: 2, kind: input, shape index: {}]   ;;  %s3299_s3 = inlined_call_operand.vmem [shape: bf16[64,64], index: 3, kind: input, shape index: {}]   ;;  %s3300_s4 = inlined_call_operand.vmem [shape: f32[1,64], index: 4, kind: input, shape index: {}]   ;;  %s3301_s5 = inlined_call_operand.hbm [shape: bf16[16,64,128], index: 5, kind: input, shape index: {}]   ;;  %s3302_s6 = inlined_call_operand.vmem [shape: f32[1,128], index: 6, kind: input, shape index: {}]   ;;  %s3303_s7 = inlined_call_operand.vmem [shape: bf16[128,128], index: 7, kind: input, shape index: {}]   ;;  %s3304_s8 = inlined_call_operand.vmem [shape: f32[1,128], index: 8, kind: input, shape index: {}]   ;;  %s3305_s9 = inlined_call_operand.hbm [shape: bf16[16,128], index: 9, kind: output, shape index: {}]  }
   0x1   :  { %15 = vsyncpa [#allocation4], 0  ;;  %s2850_s30 = smov [#allocation2]   ;;  %s2802_s13 = scalar_lea.hbm %s3301_s5, 8192 }
   0x2   :  { %s31_s10 = sshll.u32 %s2850_s30, 4  ;;  %p2803_p0 = scmp.ne.s32.totalorder %s3301_s5, %s2802_s13  ;;  %s32_s10 = int_to_ptr.vmem [resolvable:$true] %s31_s10 }
   0x3   :  { %p2806_p1 = scmp.lt.u32.totalorder %s2802_s13, %s3301_s5 }
   0x5   :  { %p2808_p2 = pnand %p2806_p1, %p2803_p0 }
   0x7   :  { %2811 = shalt.err (!%p2808_p2)
}
   0x8   :  { %s2812_s18 = scalar_lea.vmem %s32_s10, 8192  ;;  %p2817_p4 = scmp.lt.s32.totalorder %s32_s10, %s32_s10 }
   0x9   :  { %p2813_p3 = scmp.ne.s32.totalorder %s32_s10, %s2812_s18  ;;  %p2818_p5 = scmp.lt.s32.totalorder %s2812_s18, %s2812_s18 }
   0xb   :  { %p2819_p6 = por %p2818_p5, %p2817_p4 }
   0xd   :  { %p2820_p7 = pnand %p2819_p6, %p2813_p3 }
   0xf   :  { %2823 = shalt.err (!%p2820_p7)
}
  0x10   :  { %s2851_s19 = smov 64   ;;  %s2852_s20 = smov 4  }
  0x11   :  { %37 = dma.hbm_to_vmem [thread:$0]  %s3301_s5, 8192, %s32_s10, [#allocation3], %s2851_s19, %s2851_s19, %s2852_s20  }
  0x12   :  { %2846 = dma.done.wait [#allocation3], 8192  }
  0x13   :  { %2847 = vsyncadd [#allocation3], 4294959104  ;;  %vm217_vm0 = vcmask 1041408   ;;  %vm168_vm1 = vcmask 31744   ;;  %v80_v0 = vld [vmem:[%s3297_s1] sm:$0x3] }
  0x14   :  { %2702 = vmatprep.subr.msk.bf16.mxu0 %vm217_vm0, %v80_v0  ;;  %v219_v1 = vsel %vm217_vm0, %v80_v0, 0  ;;  %v2710_v2 = vld [vmem:[%s3296_s0] sm:$0xff]   ;;  %2703 = vmatprep.subr.msk.bf16.mxu1 %vm217_vm0, %v80_v0  ;;  %v2711_v3 = vld [vmem:[%s3296_s0 + $0x8] sm:$0xff]   ;;  %v2712_v4 = vld [vmem:[%s3296_s0 + $0x10] sm:$0xff]   ;;  %v2853_v23 = vmov 0.0   ;;  %vm469_vm2 = vcmask 523264  }
  0x15   :  { %2415 = vmatpush3.bf16.msra.mxu0 %v219_v1  ;;  %2701 = vmatpush3.bf16.msra.mxu1 %v219_v1  ;;  %v2713_v5 = vld [vmem:[%s3296_s0 + $0x18] sm:$0xff]   ;;  %v2714_v6 = vld [vmem:[%s3296_s0 + $0x20] sm:$0xff]   ;;  %v2723_v8 = vld [vmem:[%s3296_s0 + $0x68] sm:$0xff]   ;;  %vm2854_vm3 = vmmov 0   ;;  %s2855_s21 = smov [#allocation5]  }
  0x16   :  { %2416 = vmatprep.mubr.msk.bf16.mxu0 %vm168_vm1, %v2710_v2  ;;  %v2722_v7 = vld [vmem:[%s3296_s0 + $0x60] sm:$0xff]   ;;  %v2715_v9 = vld [vmem:[%s3296_s0 + $0x28] sm:$0xff]   ;;  %v2724_v10 = vld [vmem:[%s3296_s0 + $0x70] sm:$0xff]   ;;  %2488 = vmatprep.subr.bf16.mxu0 %v2853_v23  ;;  %s2123_s22 = sshll.u32 %s2855_s21, 4  ;;  %s2124_s22 = int_to_ptr.vmem [resolvable:$true] %s2123_s22 }
  0x17   :  { %2440 = vmatprep.mubr.msk.bf16.mxu1 %vm168_vm1, %v2722_v7  ;;  %v2716_v11 = vld [vmem:[%s3296_s0 + $0x30] sm:$0xff]   ;;  %v2726_v12 = vld [vmem:[%s3299_s3] sm:$0xff]   ;;  %v2725_v13 = vld [vmem:[%s3296_s0 + $0x78] sm:$0xff]   ;;  %p2829_p9 = scmp.lt.s32.totalorder %s2124_s22, %s2124_s22 }
  0x18   :  { %2417 = vmatmul.mubr.msk.bf16.vlgmr.msra.gmra.mrb[0].mxu0 %vm168_vm1, %v2711_v3  ;;  %2441 = vmatmul.mubr.msk.bf16.vlgmr.msra.gmra.mrb[0].mxu1 %vm168_vm1, %v2723_v8  ;;  %v2727_v14 = vld [vmem:[%s3299_s3 + $0x8] sm:$0xff]   ;;  %v2717_v15 = vld [vmem:[%s3296_s0 + $0x38] sm:$0xff]   ;;  %v2718_v16 = vld [vmem:[%s3296_s0 + $0x40] sm:$0xff]  }
  0x19   :  { %2420 = vmatprep.mubr.msk.bf16.mxu0 %vm168_vm1, %v2712_v4  ;;  %2444 = vmatprep.mubr.msk.bf16.mxu1 %vm168_vm1, %v2724_v10  ;;  %v2719_v17 = vld [vmem:[%s3296_s0 + $0x48] sm:$0xff]   ;;  %v2720_v18 = vld [vmem:[%s3296_s0 + $0x50] sm:$0xff]   ;;  %v2721_v19 = vld [vmem:[%s3296_s0 + $0x58] sm:$0xff]  }
  0x1a   :  { %2448 = vmatprep.subr.bf16.mxu1 %v2726_v12  ;;  %v2728_v20 = vld [vmem:[%s3299_s3 + $0x10] sm:$0xff]   ;;  %v2729_v21 = vld [vmem:[%s3299_s3 + $0x18] sm:$0xff]   ;;  %v2731_v22 = vld [vmem:[#allocation2 + $0x20] sm:$0xff]  }
  0x1b   :  { %2449 = vmatpush3.bf16.msra.mxu1 %v2726_v12  ;;  %2489 = vmatpush3.bf16.msra.mxu0 %v2731_v22  ;;  %v2733_v24 = vld [vmem:[#allocation2 + $0x28] sm:$0xff]   ;;  %v2735_v25 = vld [vmem:[#allocation2 + $0x30] sm:$0xff]   ;;  %v2737_v26 = vld [vmem:[#allocation2 + $0x38] sm:$0xff]  }
  0x1c   :  { %2450 = vmatprep.subr.bf16.mxu1 %v2727_v14  ;;  %2490 = vmatprep.subr.bf16.mxu0 %v2853_v23  ;;  %v3009_v27 = vld [vmem:[%s3298_s2] ss:$0 sm:$0xff]  ;;  %v2732_v56 = vld [vmem:[#allocation2 + $0x8] sm:$0xff]   ;;  %v2736_v22 = vld [vmem:[#allocation2 + $0x18] sm:$0xff]  }
  0x1d   :  { %v2730_v43 = vld [vmem:[#allocation2] sm:$0xff]  }
  0x1f   :  { %2451 = vmatpush3.bf16.msra.mxu1 %v2727_v14  ;;  %2491 = vmatpush3.bf16.msra.mxu0 %v2733_v24 }
  0x20   :  { %2421 = vmatmul.mubr.msk.bf16.gmra.mrb[4].mxu0 %vm168_vm1, %v2713_v5  ;;  %2445 = vmatmul.mubr.msk.bf16.gmra.mrb[4].mxu1 %vm168_vm1, %v2725_v13 }
  0x21   :  { %2424 = vmatprep.mubr.msk.bf16.mxu0 %vm168_vm1, %v2714_v6  ;;  %2452 = vmatprep.subr.bf16.mxu1 %v2728_v20  ;;  %v2734_v6 = vld [vmem:[#allocation2 + $0x10] sm:$0xff]  }
  0x22   :  { %2492 = vmatprep.subr.bf16.mxu0 %v2853_v23 }
  0x23   :  { %2453 = vmatpush3.bf16.msra.mxu1 %v2728_v20  ;;  %2493 = vmatpush3.bf16.msra.mxu0 %v2735_v25 }
  0x24   :  { %2454 = vmatprep.subr.bf16.mxu1 %v2729_v21  ;;  %2494 = vmatprep.subr.bf16.mxu0 %v2853_v23 }
  0x27   :  { %2455 = vmatpush3.bf16.msra.mxu1 %v2729_v21  ;;  %2495 = vmatpush3.bf16.msra.mxu0 %v2737_v26 }
  0x28   :  { %2425 = vmatmul.mubr.msk.bf16.gmra.mrb[8].mxu0 %vm168_vm1, %v2715_v9  ;;  %2500 = vmatprep.subr.bf16.mxu1 %v2853_v23 }
  0x29   :  { %2428 = vmatprep.mubr.msk.bf16.mxu0 %vm168_vm1, %v2716_v11  ;;  %2512 = vmatprep.subr.bf16.mxu0 %v2853_v23 }
  0x30   :  { %2429 = vmatmul.mubr.msk.bf16.gmra.mrb[12].mxu0 %vm168_vm1, %v2717_v15 }
  0x31   :  { %2432 = vmatprep.mubr.msk.bf16.mxu0 %vm168_vm1, %v2718_v16 }
  0x38   :  { %2433 = vmatmul.mubr.msk.bf16.gmra.mrb[16].mxu0 %vm168_vm1, %v2719_v17 }
  0x39   :  { %2436 = vmatprep.mubr.msk.bf16.mxu0 %vm168_vm1, %v2720_v18 }
  0x40   :  { %2437 = vmatmul.mubr.msk.bf16.gmra.mrb[20].mxu0 %vm168_vm1, %v2721_v19 }
  0x41   :  { %2496 = vmatprep.mubr.msk.bf16.mxu0 %vm2854_vm3, %v2853_v23 }
  0xeb   :  { %v2418_v28 = vpop.f32.mrb[0].mxu0  ;;  %v2442_v51 = vpop.f32.mrb[0].mxu1 }
  0xec   :  { %v264_v29 = vadd.f32 %v2418_v28, %v3009_v27  ;;  %v255_v30 = vpop.f32.mrb[1].mxu0  ;;  %v360_v54 = vadd.f32 %v2442_v51, %v3009_v27  ;;  %v351_v55 = vpop.f32.mrb[1].mxu1 }
  0xed   :  { %v256_v31 = vadd.f32 %v3009_v27, %v255_v30  ;;  %v2419_v32 = vpop.f32.mrb[2].mxu0  ;;  %v352_v58 = vadd.f32 %v3009_v27, %v351_v55  ;;  %v2443_v59 = vpop.f32.mrb[2].mxu1 }
  0xee   :  { %v267_v33 = vadd.f32 %v2419_v32, %v3009_v27  ;;  %v258_v34 = vpop.f32.mrb[3].mxu0  ;;  %v384_v36 = vmax.f32 %v264_v29, 0.0  ;;  %v408_v61 = vmax.f32 %v360_v54, 0.0  ;;  %v363_v62 = vadd.f32 %v2443_v59, %v3009_v27  ;;  %v354_v63 = vpop.f32.mrb[3].mxu1 }
  0xef   :  { %v259_v35 = vadd.f32 %v3009_v27, %v258_v34  ;;  %v382_v38 = vmax.f32 %v256_v31, 0.0  ;;  %v406_v1 = vmax.f32 %v352_v58, 0.0  ;;  %v355_v2 = vadd.f32 %v3009_v27, %v354_v63 }
  0xf0   :  { %v385_v37 = vmax.f32 %v267_v33, 0.0  ;;  %v409_v5 = vmax.f32 %v363_v62, 0.0 }
  0xf1   :  { %v383_v39 = vmax.f32 %v259_v35, 0.0  ;;  %v407_v9 = vmax.f32 %v355_v2, 0.0 }
  0xf2   :  { %v415_v40 = vpack.c.bf16 %v385_v37, %v384_v36  ;;  %v3030_v12 = vpack.c.bf16 %v409_v5, %v408_v61 }
  0xf3   :  { %v414_v41 = vpack.c.bf16 %v383_v39, %v382_v38  ;;  %v2422_v42 = vpop.f32.mrb[4].mxu0  ;;  %v3034_v16 = vpack.c.bf16 %v407_v9, %v406_v1  ;;  %v2446_v17 = vpop.f32.mrb[4].mxu1 }
  0xf4   :  { %v280_v44 = vadd.f32 %v2422_v42, %v3009_v27  ;;  %v271_v45 = vpop.f32.mrb[5].mxu0  ;;  %v376_v20 = vadd.f32 %v2446_v17, %v3009_v27  ;;  %v367_v21 = vpop.f32.mrb[5].mxu1 }
  0xf5   :  { %v272_v46 = vadd.f32 %v3009_v27, %v271_v45  ;;  %v2423_v47 = vpop.f32.mrb[6].mxu0  ;;  %2456 = vmatprep.mubr.msk.bf16.mxu1 %vm469_vm2, %v414_v41  ;;  %v368_v25 = vadd.f32 %v3009_v27, %v367_v21  ;;  %v2447_v26 = vpop.f32.mrb[6].mxu1 }
  0xf6   :  { %v388_v48 = vmax.f32 %v280_v44, 0.0  ;;  %v283_v49 = vadd.f32 %v2423_v47, %v3009_v27  ;;  %v274_v50 = vpop.f32.mrb[7].mxu0  ;;  %2457 = vmatmul.mubr.msk.bf16.vlgmr.msra.gmra.mrb[8].mxu1 %vm469_vm2, %v415_v40  ;;  %v412_v29 = vmax.f32 %v376_v20, 0.0  ;;  %v379_v30 = vadd.f32 %v2447_v26, %v3009_v27  ;;  %v370_v31 = vpop.f32.mrb[7].mxu1 }
  0xf7   :  { %v386_v52 = vmax.f32 %v272_v46, 0.0  ;;  %v275_v53 = vadd.f32 %v3009_v27, %v274_v50  ;;  %2501 = vmatpush3.bf16.msra.mxu1 %v2730_v43  ;;  %v410_v33 = vmax.f32 %v368_v25, 0.0  ;;  %v371_v34 = vadd.f32 %v3009_v27, %v370_v31 }
  0xf8   :  { %v389_v57 = vmax.f32 %v283_v49, 0.0  ;;  %2502 = vmatprep.subr.bf16.mxu1 %v2853_v23  ;;  %v413_v37 = vmax.f32 %v379_v30, 0.0 }
  0xf9   :  { %v387_v60 = vmax.f32 %v275_v53, 0.0  ;;  %v411_v40 = vmax.f32 %v371_v34, 0.0  ;;  %v2739_v34 = vld [vmem:[#allocation2 + $0x60] sm:$0xff]  }
  0xfa   :  { %v417_v0 = vpack.c.bf16 %v389_v57, %v388_v48  ;;  %v429_v43 = vpack.c.bf16 %v413_v37, %v412_v29 }
  0xfb   :  { %v416_v3 = vpack.c.bf16 %v387_v60, %v386_v52  ;;  %v2426_v4 = vpop.f32.mrb[8].mxu0  ;;  %2503 = vmatpush3.bf16.msra.mxu1 %v2732_v56  ;;  %v428_v47 = vpack.c.bf16 %v411_v40, %v410_v33 }
  0xfc   :  { %v296_v7 = vadd.f32 %v2426_v4, %v3009_v27  ;;  %v287_v8 = vpop.f32.mrb[9].mxu0  ;;  %2504 = vmatprep.subr.bf16.mxu1 %v2853_v23 }
  0xfd   :  { %2460 = vmatprep.mubr.msk.bf16.mxu1 %vm469_vm2, %v416_v3  ;;  %v288_v10 = vadd.f32 %v3009_v27, %v287_v8  ;;  %v2427_v11 = vpop.f32.mrb[10].mxu0 }
  0xfe   :  { %2461 = vmatmul.mubr.msk.bf16.gmra.mrb[12].mxu1 %vm469_vm2, %v417_v0  ;;  %v392_v13 = vmax.f32 %v296_v7, 0.0  ;;  %v299_v14 = vadd.f32 %v2427_v11, %v3009_v27  ;;  %v290_v15 = vpop.f32.mrb[11].mxu0 }
  0xff   :  { %v390_v18 = vmax.f32 %v288_v10, 0.0  ;;  %v291_v19 = vadd.f32 %v3009_v27, %v290_v15  ;;  %2505 = vmatpush3.bf16.msra.mxu1 %v2734_v6 }
 0x100   :  { %v393_v24 = vmax.f32 %v299_v14, 0.0  ;;  %2506 = vmatprep.subr.bf16.mxu1 %v2853_v23 }
 0x101   :  { %v391_v28 = vmax.f32 %v291_v19, 0.0 }
 0x102   :  { %v419_v32 = vpack.c.bf16 %v393_v24, %v392_v13 }
 0x103   :  { %v418_v35 = vpack.c.bf16 %v391_v28, %v390_v18  ;;  %v2430_v36 = vpop.f32.mrb[12].mxu0  ;;  %2507 = vmatpush3.bf16.msra.mxu1 %v2736_v22 }
 0x104   :  { %v312_v38 = vadd.f32 %v2430_v36, %v3009_v27  ;;  %v303_v39 = vpop.f32.mrb[13].mxu0  ;;  %2524 = vmatprep.subr.bf16.mxu1 %v2853_v23 }
 0x105   :  { %2464 = vmatprep.mubr.msk.bf16.mxu1 %vm469_vm2, %v418_v35  ;;  %v304_v41 = vadd.f32 %v3009_v27, %v303_v39  ;;  %v2431_v42 = vpop.f32.mrb[14].mxu0 }
 0x106   :  { %2465 = vmatmul.mubr.msk.bf16.gmra.mrb[16].mxu1 %vm469_vm2, %v419_v32  ;;  %v396_v44 = vmax.f32 %v312_v38, 0.0  ;;  %v315_v45 = vadd.f32 %v2431_v42, %v3009_v27  ;;  %v306_v46 = vpop.f32.mrb[15].mxu0  ;;  %v2738_v32 = vld [vmem:[#allocation2 + $0x40] sm:$0xff]  }
 0x107   :  { %v394_v48 = vmax.f32 %v304_v41, 0.0  ;;  %v307_v49 = vadd.f32 %v3009_v27, %v306_v46  ;;  %v2740_v41 = vld [vmem:[#allocation2 + $0x48] sm:$0xff]  }
 0x108   :  { %v397_v50 = vmax.f32 %v315_v45, 0.0  ;;  %v2741_v45 = vld [vmem:[#allocation2 + $0x68] sm:$0xff]  }
 0x109   :  { %v395_v51 = vmax.f32 %v307_v49, 0.0 }
 0x10a   :  { %v421_v52 = vpack.c.bf16 %v397_v50, %v396_v44  ;;  %v2742_v50 = vld [vmem:[#allocation2 + $0x50] sm:$0xff]  }
 0x10b   :  { %v420_v53 = vpack.c.bf16 %v395_v51, %v394_v48  ;;  %v2434_v54 = vpop.f32.mrb[16].mxu0 }
 0x10c   :  { %v328_v55 = vadd.f32 %v2434_v54, %v3009_v27  ;;  %v319_v56 = vpop.f32.mrb[17].mxu0 }
 0x10d   :  { %2468 = vmatprep.mubr.msk.bf16.mxu1 %vm469_vm2, %v420_v53  ;;  %v320_v57 = vadd.f32 %v3009_v27, %v319_v56  ;;  %v2435_v58 = vpop.f32.mrb[18].mxu0 }
 0x10e   :  { %2469 = vmatmul.mubr.msk.bf16.gmra.mrb[20].mxu1 %vm469_vm2, %v421_v52  ;;  %v400_v59 = vmax.f32 %v328_v55, 0.0  ;;  %v331_v60 = vadd.f32 %v2435_v58, %v3009_v27  ;;  %v322_v61 = vpop.f32.mrb[19].mxu0  ;;  %v2743_v52 = vld [vmem:[#allocation2 + $0x70] sm:$0xff]  }
 0x10f   :  { %v398_v62 = vmax.f32 %v320_v57, 0.0  ;;  %v323_v63 = vadd.f32 %v3009_v27, %v322_v61  ;;  %v2744_v57 = vld [vmem:[#allocation2 + $0x58] sm:$0xff]  }
 0x110   :  { %v401_v0 = vmax.f32 %v331_v60, 0.0  ;;  %v2745_v60 = vld [vmem:[#allocation2 + $0x78] sm:$0xff]  }
 0x111   :  { %v399_v1 = vmax.f32 %v323_v63, 0.0 }
 0x112   :  { %v423_v2 = vpack.c.bf16 %v401_v0, %v400_v59 }
 0x113   :  { %v422_v3 = vpack.c.bf16 %v399_v1, %v398_v62  ;;  %v2438_v4 = vpop.f32.mrb[20].mxu0 }
 0x114   :  { %v344_v5 = vadd.f32 %v2438_v4, %v3009_v27  ;;  %v335_v6 = vpop.f32.mrb[21].mxu0 }
 0x115   :  { %2472 = vmatprep.mubr.msk.bf16.mxu1 %vm469_vm2, %v422_v3  ;;  %v336_v7 = vadd.f32 %v3009_v27, %v335_v6  ;;  %v2439_v8 = vpop.f32.mrb[22].mxu0  ;;  %v2746_v3 = vld [vmem:[#allocation2 + $0x80] sm:$0xff]  }
 0x116   :  { %2473 = vmatmul.mubr.msk.bf16.gmra.mrb[24].mxu1 %vm469_vm2, %v423_v2  ;;  %v404_v9 = vmax.f32 %v344_v5, 0.0  ;;  %v347_v10 = vadd.f32 %v2439_v8, %v3009_v27  ;;  %v338_v11 = vpop.f32.mrb[23].mxu0  ;;  %v2747_v6 = vld [vmem:[#allocation2 + $0xa0] sm:$0xff]  }
 0x117   :  { %v402_v13 = vmax.f32 %v336_v7, 0.0  ;;  %v339_v14 = vadd.f32 %v3009_v27, %v338_v11  ;;  %v3076_v27 = vld [vmem:[%s3300_s4] ss:$0 sm:$0xff]  ;;  %v2748_v11 = vld [vmem:[#allocation2 + $0x88] sm:$0xff]  }
 0x118   :  { %v405_v15 = vmax.f32 %v347_v10, 0.0 }
 0x119   :  { %v403_v17 = vmax.f32 %v339_v14, 0.0 }
 0x11a   :  { %v425_v18 = vpack.c.bf16 %v405_v15, %v404_v9  ;;  %v2749_v15 = vld [vmem:[#allocation2 + $0xa8] sm:$0xff]  }
 0x11b   :  { %v424_v19 = vpack.c.bf16 %v403_v17, %v402_v13 }
 0x11d   :  { %2476 = vmatprep.mubr.msk.bf16.mxu1 %vm469_vm2, %v424_v19 }
 0x11e   :  { %2477 = vmatmul.mubr.msk.bf16.gmra.mrb[28].mxu1 %vm469_vm2, %v425_v18 }
 0x11f   :  { %2480 = vmatprep.mubr.msk.bf16.mxu1 %vm469_vm2, %v3034_v16 }
 0x126   :  { %2481 = vmatmul.mubr.msk.bf16.gmra.mrb[32].mxu1 %vm469_vm2, %v3030_v12 }
 0x127   :  { %2484 = vmatprep.mubr.msk.bf16.mxu1 %vm469_vm2, %v428_v47 }
 0x12e   :  { %2485 = vmatmul.mubr.msk.bf16.gmra.mrb[36].mxu1 %vm469_vm2, %v429_v43 }
 0x12f   :  { %2508 = vmatprep.mubr.msk.bf16.mxu1 %vm2854_vm3, %v2853_v23 }
 0x1c9   :  { %v2458_v16 = vpop.f32.mrb[8].mxu1 }
 0x1ca   :  { %v561_v20 = vadd.f32 %v2458_v16, %v3076_v27  ;;  %v552_v12 = vpop.f32.mrb[9].mxu1 }
 0x1cb   :  { %v553_v21 = vadd.f32 %v3076_v27, %v552_v12  ;;  %v2459_v22 = vpop.f32.mrb[10].mxu1 }
 0x1cc   :  { %v564_v24 = vadd.f32 %v2459_v22, %v3076_v27  ;;  %v555_v25 = vpop.f32.mrb[11].mxu1  ;;  %v681_v28 = vmax.f32 %v561_v20, 0.0 }
 0x1cd   :  { %v556_v26 = vadd.f32 %v3076_v27, %v555_v25  ;;  %v679_v30 = vmax.f32 %v553_v21, 0.0  ;;  %v2750_v21 = vld [vmem:[#allocation2 + $0x90] sm:$0xff]  }
 0x1ce   :  { %v682_v29 = vmax.f32 %v564_v24, 0.0  ;;  %v2751_v24 = vld [vmem:[#allocation2 + $0xb0] sm:$0xff]  }
 0x1cf   :  { %v680_v31 = vmax.f32 %v556_v26, 0.0 }
 0x1d0   :  { %v712_v33 = vpack.c.bf16 %v682_v29, %v681_v28 }
 0x1d1   :  { %v711_v35 = vpack.c.bf16 %v680_v31, %v679_v30  ;;  %v2462_v36 = vpop.f32.mrb[12].mxu1  ;;  %v2752_v31 = vld [vmem:[#allocation2 + $0x98] sm:$0xff]  }
 0x1d2   :  { %v577_v37 = vadd.f32 %v2462_v36, %v3076_v27  ;;  %v568_v38 = vpop.f32.mrb[13].mxu1  ;;  %2497 = vmatmul.mubr.msk.bf16.vlgmr.msra.gmra.mrb[24].mxu0 %vm469_vm2, %v712_v33 }
 0x1d3   :  { %v569_v39 = vadd.f32 %v3076_v27, %v568_v38  ;;  %2513 = vmatpush3.bf16.msra.mxu0 %v2738_v32  ;;  %v2463_v40 = vpop.f32.mrb[14].mxu1  ;;  %2509 = vmatmul.mubr.msk.bf16.vlgmr.msra.gmra.mrb[40].mxu1 %vm469_vm2, %v711_v35 }
 0x1d4   :  { %v685_v42 = vmax.f32 %v577_v37, 0.0  ;;  %v580_v43 = vadd.f32 %v2463_v40, %v3076_v27  ;;  %2525 = vmatpush3.bf16.msra.mxu1 %v2739_v34  ;;  %v571_v44 = vpop.f32.mrb[15].mxu1  ;;  %2514 = vmatprep.subr.bf16.mxu0 %v2853_v23  ;;  %v2753_v34 = vld [vmem:[#allocation2 + $0xb8] sm:$0xff]  }
 0x1d5   :  { %v683_v46 = vmax.f32 %v569_v39, 0.0  ;;  %v572_v47 = vadd.f32 %v3076_v27, %v571_v44  ;;  %2526 = vmatprep.subr.bf16.mxu1 %v2853_v23  ;;  %2520 = vmatprep.mubr.msk.bf16.mxu0 %vm2854_vm3, %v2853_v23 }
 0x1d6   :  { %v686_v48 = vmax.f32 %v580_v43, 0.0  ;;  %2532 = vmatprep.mubr.msk.bf16.mxu1 %vm2854_vm3, %v2853_v23  ;;  %v2755_v43 = vld [vmem:[#allocation2 + $0xe0] sm:$0xff]  }
 0x1d7   :  { %v684_v49 = vmax.f32 %v572_v47, 0.0  ;;  %2515 = vmatpush3.bf16.msra.mxu0 %v2740_v41  ;;  %v2754_v41 = vld [vmem:[#allocation2 + $0xc0] sm:$0xff]  }
 0x1d8   :  { %v714_v51 = vpack.c.bf16 %v686_v48, %v685_v42  ;;  %2527 = vmatpush3.bf16.msra.mxu1 %v2741_v45  ;;  %2516 = vmatprep.subr.bf16.mxu0 %v2853_v23 }
 0x1d9   :  { %v713_v53 = vpack.c.bf16 %v684_v49, %v683_v46  ;;  %2528 = vmatprep.subr.bf16.mxu1 %v2853_v23  ;;  %v2466_v54 = vpop.f32.mrb[16].mxu1  ;;  %v2756_v49 = vld [vmem:[#allocation2 + $0xc8] sm:$0xff]  }
 0x1da   :  { %v593_v55 = vadd.f32 %v2466_v54, %v3076_v27  ;;  %v584_v56 = vpop.f32.mrb[17].mxu1 }
 0x1db   :  { %2517 = vmatpush3.bf16.msra.mxu0 %v2742_v50  ;;  %v585_v58 = vadd.f32 %v3076_v27, %v584_v56  ;;  %v2467_v59 = vpop.f32.mrb[18].mxu1 }
 0x1dc   :  { %2529 = vmatpush3.bf16.msra.mxu1 %v2743_v52  ;;  %2518 = vmatprep.subr.bf16.mxu0 %v2853_v23  ;;  %v689_v61 = vmax.f32 %v593_v55, 0.0  ;;  %v596_v62 = vadd.f32 %v2467_v59, %v3076_v27  ;;  %v587_v63 = vpop.f32.mrb[19].mxu1  ;;  %v2757_v52 = vld [vmem:[#allocation2 + $0xe8] sm:$0xff]   ;;  %v2758_v59 = vld [vmem:[#allocation2 + $0xd0] sm:$0xff]  }
 0x1dd   :  { %2530 = vmatprep.subr.bf16.mxu1 %v2853_v23  ;;  %v687_v0 = vmax.f32 %v585_v58, 0.0  ;;  %v588_v1 = vadd.f32 %v3076_v27, %v587_v63 }
 0x1de   :  { %v690_v2 = vmax.f32 %v596_v62, 0.0 }
 0x1df   :  { %2519 = vmatpush3.bf16.msra.mxu0 %v2744_v57  ;;  %v688_v4 = vmax.f32 %v588_v1, 0.0 }
 0x1e0   :  { %2531 = vmatpush3.bf16.msra.mxu1 %v2745_v60  ;;  %2536 = vmatprep.subr.bf16.mxu0 %v2853_v23  ;;  %v3103_v5 = vpack.c.bf16 %v690_v2, %v689_v61  ;;  %v2759_v61 = vld [vmem:[#allocation2 + $0xf0] sm:$0xff]  }
 0x1e1   :  { %2548 = vmatprep.subr.bf16.mxu1 %v2853_v23  ;;  %v715_v7 = vpack.c.bf16 %v688_v4, %v687_v0  ;;  %v2470_v8 = vpop.f32.mrb[20].mxu1 }
 0x1e2   :  { %2521 = vmatmul.mubr.msk.bf16.vlgmr.msra.gmra.mrb[28].mxu0 %vm469_vm2, %v713_v53  ;;  %v609_v9 = vadd.f32 %v2470_v8, %v3076_v27  ;;  %v600_v10 = vpop.f32.mrb[21].mxu1 }
 0x1e3   :  { %2533 = vmatmul.mubr.msk.bf16.vlgmr.msra.gmra.mrb[44].mxu1 %vm469_vm2, %v714_v51  ;;  %2537 = vmatpush3.bf16.msra.mxu0 %v2746_v3  ;;  %v601_v13 = vadd.f32 %v3076_v27, %v600_v10  ;;  %v2471_v14 = vpop.f32.mrb[22].mxu1  ;;  %v2760_v3 = vld [vmem:[#allocation2 + $0xd8] sm:$0xff]  }
 0x1e4   :  { %2549 = vmatpush3.bf16.msra.mxu1 %v2747_v6  ;;  %2538 = vmatprep.subr.bf16.mxu0 %v2853_v23  ;;  %v693_v17 = vmax.f32 %v609_v9, 0.0  ;;  %v612_v18 = vadd.f32 %v2471_v14, %v3076_v27  ;;  %v603_v19 = vpop.f32.mrb[23].mxu1  ;;  %v2761_v6 = vld [vmem:[#allocation2 + $0xf8] sm:$0xff]   ;;  %v2762_v14 = vld [vmem:[#allocation2 + $0x100] sm:$0xff]  }
 0x1e5   :  { %2550 = vmatprep.subr.bf16.mxu1 %v2853_v23  ;;  %2544 = vmatprep.mubr.msk.bf16.mxu0 %vm2854_vm3, %v2853_v23  ;;  %v691_v16 = vmax.f32 %v601_v13, 0.0  ;;  %v604_v20 = vadd.f32 %v3076_v27, %v603_v19 }
 0x1e6   :  { %2556 = vmatprep.mubr.msk.bf16.mxu1 %vm2854_vm3, %v2853_v23  ;;  %v694_v12 = vmax.f32 %v612_v18, 0.0 }
 0x1e7   :  { %2539 = vmatpush3.bf16.msra.mxu0 %v2748_v11  ;;  %v692_v22 = vmax.f32 %v604_v20, 0.0 }
 0x1e8   :  { %2551 = vmatpush3.bf16.msra.mxu1 %v2749_v15  ;;  %2540 = vmatprep.subr.bf16.mxu0 %v2853_v23  ;;  %v3119_v25 = vpack.c.bf16 %v694_v12, %v693_v17  ;;  %v2763_v17 = vld [vmem:[#allocation2 + $0x120] sm:$0xff]  }
 0x1e9   :  { %2552 = vmatprep.subr.bf16.mxu1 %v2853_v23  ;;  %v3122_v26 = vpack.c.bf16 %v692_v22, %v691_v16  ;;  %v2474_v28 = vpop.f32.mrb[24].mxu1 }
 0x1ea   :  { %v625_v29 = vadd.f32 %v2474_v28, %v3076_v27  ;;  %v616_v30 = vpop.f32.mrb[25].mxu1  ;;  %v2765_v28 = vld [vmem:[#allocation2 + $0x128] sm:$0xff]  }
 0x1eb   :  { %2541 = vmatpush3.bf16.msra.mxu0 %v2750_v21  ;;  %v617_v32 = vadd.f32 %v3076_v27, %v616_v30  ;;  %v2475_v33 = vpop.f32.mrb[26].mxu1  ;;  %v2764_v21 = vld [vmem:[#allocation2 + $0x108] sm:$0xff]  }
 0x1ec   :  { %2553 = vmatpush3.bf16.msra.mxu1 %v2751_v24  ;;  %2542 = vmatprep.subr.bf16.mxu0 %v2853_v23  ;;  %v697_v35 = vmax.f32 %v625_v29, 0.0  ;;  %v628_v36 = vadd.f32 %v2475_v33, %v3076_v27  ;;  %v619_v37 = vpop.f32.mrb[27].mxu1  ;;  %v2766_v33 = vld [vmem:[#allocation2 + $0x110] sm:$0xff]  }
 0x1ed   :  { %2554 = vmatprep.subr.bf16.mxu1 %v2853_v23  ;;  %v695_v38 = vmax.f32 %v617_v32, 0.0  ;;  %v620_v39 = vadd.f32 %v3076_v27, %v619_v37 }
 0x1ee   :  { %v698_v40 = vmax.f32 %v628_v36, 0.0 }
 0x1ef   :  { %2543 = vmatpush3.bf16.msra.mxu0 %v2752_v31  ;;  %v696_v42 = vmax.f32 %v620_v39, 0.0  ;;  %v2770_v39 = vld [vmem:[#allocation2 + $0x140] sm:$0xff]  }
 0x1f0   :  { %2555 = vmatpush3.bf16.msra.mxu1 %v2753_v34  ;;  %2560 = vmatprep.subr.bf16.mxu0 %v2853_v23  ;;  %v3131_v44 = vpack.c.bf16 %v698_v40, %v697_v35  ;;  %v2767_v35 = vld [vmem:[#allocation2 + $0x130] sm:$0xff]   ;;  %v2771_v40 = vld [vmem:[#allocation2 + $0x160] sm:$0xff]  }
 0x1f1   :  { %2572 = vmatprep.subr.bf16.mxu1 %v2853_v23  ;;  %v3134_v45 = vpack.c.bf16 %v696_v42, %v695_v38  ;;  %v2478_v46 = vpop.f32.mrb[28].mxu1  ;;  %v2768_v38 = vld [vmem:[#allocation2 + $0x118] sm:$0xff]   ;;  %v2773_v42 = vld [vmem:[#allocation2 + $0x168] sm:$0xff]  }
 0x1f2   :  { %2545 = vmatmul.mubr.msk.bf16.vlgmr.msra.gmra.mrb[32].mxu0 %vm469_vm2, %v715_v7  ;;  %v641_v47 = vadd.f32 %v2478_v46, %v3076_v27  ;;  %v632_v48 = vpop.f32.mrb[29].mxu1  ;;  %v2777_v46 = vld [vmem:[#allocation2 + $0x178] sm:$0xff]  }
 0x1f3   :  { %2557 = vmatmul.mubr.msk.bf16.vlgmr.msra.gmra.mrb[48].mxu1 %vm469_vm2, %v3103_v5  ;;  %2561 = vmatpush3.bf16.msra.mxu0 %v2754_v41  ;;  %v633_v50 = vadd.f32 %v3076_v27, %v632_v48  ;;  %v2479_v51 = vpop.f32.mrb[30].mxu1  ;;  %v2772_v41 = vld [vmem:[#allocation2 + $0x148] sm:$0xff]   ;;  %v2779_v48 = vld [vmem:[#allocation2 + $0x1a0] sm:$0xff]  }
 0x1f4   :  { %2573 = vmatpush3.bf16.msra.mxu1 %v2755_v43  ;;  %2562 = vmatprep.subr.bf16.mxu0 %v2853_v23  ;;  %v701_v53 = vmax.f32 %v641_v47, 0.0  ;;  %v644_v54 = vadd.f32 %v2479_v51, %v3076_v27  ;;  %v635_v55 = vpop.f32.mrb[31].mxu1  ;;  %v2774_v43 = vld [vmem:[#allocation2 + $0x150] sm:$0xff]   ;;  %v2778_v47 = vld [vmem:[#allocation2 + $0x180] sm:$0xff]  }
 0x1f5   :  { %2574 = vmatprep.subr.bf16.mxu1 %v2853_v23  ;;  %2568 = vmatprep.mubr.msk.bf16.mxu0 %vm2854_vm3, %v2853_v23  ;;  %v699_v56 = vmax.f32 %v633_v50, 0.0  ;;  %v636_v57 = vadd.f32 %v3076_v27, %v635_v55  ;;  %v2781_v50 = vld [vmem:[#allocation2 + $0x1a8] sm:$0xff]   ;;  %v2782_v51 = vld [vmem:[#allocation2 + $0x190] sm:$0xff]   ;;  %v2786_v55 = vld [vmem:[#allocation2 + $0x1c0] sm:$0xff]  }
 0x1f6   :  { %2580 = vmatprep.mubr.msk.bf16.mxu1 %vm2854_vm3, %v2853_v23  ;;  %v702_v58 = vmax.f32 %v644_v54, 0.0  ;;  %v2785_v54 = vld [vmem:[#allocation2 + $0x1b8] sm:$0xff]  }
 0x1f7   :  { %2563 = vmatpush3.bf16.msra.mxu0 %v2756_v49  ;;  %v700_v60 = vmax.f32 %v636_v57, 0.0  ;;  %v2780_v49 = vld [vmem:[#allocation2 + $0x188] sm:$0xff]  }
 0x1f8   :  { %2575 = vmatpush3.bf16.msra.mxu1 %v2757_v52  ;;  %2564 = vmatprep.subr.bf16.mxu0 %v2853_v23  ;;  %v3150_v62 = vpack.c.bf16 %v702_v58, %v701_v53  ;;  %v2783_v52 = vld [vmem:[#allocation2 + $0x1b0] sm:$0xff]   ;;  %v2784_v53 = vld [vmem:[#allocation2 + $0x198] sm:$0xff]   ;;  %v2788_v57 = vld [vmem:[#allocation2 + $0x1c8] sm:$0xff]  }
 0x1f9   :  { %2576 = vmatprep.subr.bf16.mxu1 %v2853_v23  ;;  %v3153_v63 = vpack.c.bf16 %v700_v60, %v699_v56  ;;  %v2482_v0 = vpop.f32.mrb[32].mxu1  ;;  %v2787_v56 = vld [vmem:[#allocation2 + $0x1e0] sm:$0xff]   ;;  %v2789_v58 = vld [vmem:[#allocation2 + $0x1e8] sm:$0xff]   ;;  %v2791_v60 = vld [vmem:[#allocation2 + $0x1f0] sm:$0xff]  }
 0x1fa   :  { %v657_v1 = vadd.f32 %v2482_v0, %v3076_v27  ;;  %v648_v2 = vpop.f32.mrb[33].mxu1  ;;  %v2795_v0 = vld [vmem:[%s3303_s7 + $0x8] sm:$0xff]  }
 0x1fb   :  { %2565 = vmatpush3.bf16.msra.mxu0 %v2758_v59  ;;  %v649_v4 = vadd.f32 %v3076_v27, %v648_v2  ;;  %v2483_v5 = vpop.f32.mrb[34].mxu1  ;;  %v2790_v59 = vld [vmem:[#allocation2 + $0x1d0] sm:$0xff]   ;;  %v2797_v2 = vld [vmem:[%s3303_s7 + $0x18] sm:$0xff]  }
 0x1fc   :  { %2577 = vmatpush3.bf16.msra.mxu1 %v2759_v61  ;;  %2566 = vmatprep.subr.bf16.mxu0 %v2853_v23  ;;  %v705_v7 = vmax.f32 %v657_v1, 0.0  ;;  %v660_v8 = vadd.f32 %v2483_v5, %v3076_v27  ;;  %v651_v9 = vpop.f32.mrb[35].mxu1  ;;  %v2792_v61 = vld [vmem:[#allocation2 + $0x1d8] sm:$0xff]   ;;  %v2796_v1 = vld [vmem:[%s3303_s7 + $0x10] sm:$0xff]  }
 0x1fd   :  { %2578 = vmatprep.subr.bf16.mxu1 %v2853_v23  ;;  %v703_v10 = vmax.f32 %v649_v4, 0.0  ;;  %v652_v11 = vadd.f32 %v3076_v27, %v651_v9  ;;  %v2799_v4 = vld [vmem:[%s3303_s7 + $0x28] sm:$0xff]   ;;  %v2800_v5 = vld [vmem:[%s3303_s7 + $0x30] sm:$0xff]  }
 0x1fe   :  { %v706_v13 = vmax.f32 %v660_v8, 0.0 }
 0x1ff   :  { %2567 = vmatpush3.bf16.msra.mxu0 %v2760_v3  ;;  %v704_v15 = vmax.f32 %v652_v11, 0.0  ;;  %v2798_v3 = vld [vmem:[%s3303_s7 + $0x20] sm:$0xff]  }
 0x200   :  { %2579 = vmatpush3.bf16.msra.mxu1 %v2761_v6  ;;  %2584 = vmatprep.subr.bf16.mxu0 %v2853_v23  ;;  %v3162_v18 = vpack.c.bf16 %v706_v13, %v705_v7  ;;  %v2801_v6 = vld [vmem:[%s3303_s7 + $0x38] sm:$0xff]  }
 0x201   :  { %2596 = vmatprep.subr.bf16.mxu1 %v2853_v23  ;;  %v3165_v19 = vpack.c.bf16 %v704_v15, %v703_v10  ;;  %v2486_v16 = vpop.f32.mrb[36].mxu1 }
 0x202   :  { %2569 = vmatmul.mubr.msk.bf16.vlgmr.msra.gmra.mrb[36].mxu0 %vm469_vm2, %v3122_v26  ;;  %v673_v20 = vadd.f32 %v2486_v16, %v3076_v27  ;;  %v664_v12 = vpop.f32.mrb[37].mxu1 }
 0x203   :  { %2581 = vmatmul.mubr.msk.bf16.vlgmr.msra.gmra.mrb[52].mxu1 %vm469_vm2, %v3119_v25  ;;  %2585 = vmatpush3.bf16.msra.mxu0 %v2762_v14  ;;  %v665_v22 = vadd.f32 %v3076_v27, %v664_v12  ;;  %v2487_v24 = vpop.f32.mrb[38].mxu1 }
 0x204   :  { %2597 = vmatpush3.bf16.msra.mxu1 %v2763_v17  ;;  %2586 = vmatprep.subr.bf16.mxu0 %v2853_v23  ;;  %v709_v29 = vmax.f32 %v673_v20, 0.0  ;;  %v676_v30 = vadd.f32 %v2487_v24, %v3076_v27  ;;  %v667_v31 = vpop.f32.mrb[39].mxu1 }
 0x205   :  { %2598 = vmatprep.subr.bf16.mxu1 %v2853_v23  ;;  %2592 = vmatprep.mubr.msk.bf16.mxu0 %vm2854_vm3, %v2853_v23  ;;  %v707_v26 = vmax.f32 %v665_v22, 0.0  ;;  %v668_v25 = vadd.f32 %v3076_v27, %v667_v31  ;;  %v2769_v27 = vld [vmem:[#allocation2 + $0x138] sm:$0xff]  }
 0x206   :  { %2604 = vmatprep.mubr.msk.bf16.mxu1 %vm2854_vm3, %v2853_v23  ;;  %v710_v32 = vmax.f32 %v676_v30, 0.0 }
 0x207   :  { %2587 = vmatpush3.bf16.msra.mxu0 %v2764_v21  ;;  %v708_v34 = vmax.f32 %v668_v25, 0.0 }
 0x208   :  { %2599 = vmatpush3.bf16.msra.mxu1 %v2765_v28  ;;  %2588 = vmatprep.subr.bf16.mxu0 %v2853_v23  ;;  %v3182_v36 = vpack.c.bf16 %v710_v32, %v709_v29 }
 0x209   :  { %2600 = vmatprep.subr.bf16.mxu1 %v2853_v23  ;;  %v3185_v37 = vpack.c.bf16 %v708_v34, %v707_v26 }
 0x20b   :  { %2589 = vmatpush3.bf16.msra.mxu0 %v2766_v33 }
 0x20c   :  { %2601 = vmatpush3.bf16.msra.mxu1 %v2767_v35  ;;  %2590 = vmatprep.subr.bf16.mxu0 %v2853_v23 }
 0x20d   :  { %2602 = vmatprep.subr.bf16.mxu1 %v2853_v23 }
 0x20f   :  { %2591 = vmatpush3.bf16.msra.mxu0 %v2768_v38 }
 0x210   :  { %2603 = vmatpush3.bf16.msra.mxu1 %v2769_v27  ;;  %2608 = vmatprep.subr.bf16.mxu0 %v2853_v23 }
 0x211   :  { %2620 = vmatprep.subr.bf16.mxu1 %v2853_v23 }
 0x212   :  { %2593 = vmatmul.mubr.msk.bf16.vlgmr.msra.gmra.mrb[40].mxu0 %vm469_vm2, %v3134_v45  ;;  %v2776_v45 = vld [vmem:[#allocation2 + $0x158] sm:$0xff]  }
 0x213   :  { %2605 = vmatmul.mubr.msk.bf16.vlgmr.msra.gmra.mrb[56].mxu1 %vm469_vm2, %v3131_v44  ;;  %2609 = vmatpush3.bf16.msra.mxu0 %v2770_v39  ;;  %v2775_v44 = vld [vmem:[#allocation2 + $0x170] sm:$0xff]  }
 0x214   :  { %2621 = vmatpush3.bf16.msra.mxu1 %v2771_v40  ;;  %2610 = vmatprep.subr.bf16.mxu0 %v2853_v23 }
 0x215   :  { %2622 = vmatprep.subr.bf16.mxu1 %v2853_v23  ;;  %2616 = vmatprep.mubr.msk.bf16.mxu0 %vm2854_vm3, %v2853_v23 }
 0x216   :  { %2628 = vmatprep.mubr.msk.bf16.mxu1 %vm2854_vm3, %v2853_v23 }
 0x217   :  { %2611 = vmatpush3.bf16.msra.mxu0 %v2772_v41 }
 0x218   :  { %2623 = vmatpush3.bf16.msra.mxu1 %v2773_v42  ;;  %2612 = vmatprep.subr.bf16.mxu0 %v2853_v23 }
 0x219   :  { %2624 = vmatprep.subr.bf16.mxu1 %v2853_v23 }
 0x21b   :  { %2613 = vmatpush3.bf16.msra.mxu0 %v2774_v43 }
 0x21c   :  { %2625 = vmatpush3.bf16.msra.mxu1 %v2775_v44  ;;  %2614 = vmatprep.subr.bf16.mxu0 %v2853_v23 }
 0x21d   :  { %2626 = vmatprep.subr.bf16.mxu1 %v2853_v23 }
 0x21f   :  { %2615 = vmatpush3.bf16.msra.mxu0 %v2776_v45 }
 0x220   :  { %2627 = vmatpush3.bf16.msra.mxu1 %v2777_v46  ;;  %2632 = vmatprep.subr.bf16.mxu0 %v2853_v23 }
 0x221   :  { %2644 = vmatprep.subr.bf16.mxu1 %v2853_v23 }
 0x222   :  { %2617 = vmatmul.mubr.msk.bf16.vlgmr.msra.gmra.mrb[44].mxu0 %vm469_vm2, %v3153_v63  ;;  %v2794_v63 = vld [vmem:[%s3303_s7] sm:$0xff]  }
 0x223   :  { %2629 = vmatmul.mubr.msk.bf16.vlgmr.msra.gmra.mrb[60].mxu1 %vm469_vm2, %v3150_v62  ;;  %2633 = vmatpush3.bf16.msra.mxu0 %v2778_v47  ;;  %v2793_v62 = vld [vmem:[#allocation2 + $0x1f8] sm:$0xff]  }
 0x224   :  { %2645 = vmatpush3.bf16.msra.mxu1 %v2779_v48  ;;  %2634 = vmatprep.subr.bf16.mxu0 %v2853_v23 }
 0x225   :  { %2646 = vmatprep.subr.bf16.mxu1 %v2853_v23  ;;  %2640 = vmatprep.mubr.msk.bf16.mxu0 %vm2854_vm3, %v2853_v23 }
 0x226   :  { %2652 = vmatprep.mubr.msk.bf16.mxu1 %vm2854_vm3, %v2853_v23 }
 0x227   :  { %2635 = vmatpush3.bf16.msra.mxu0 %v2780_v49 }
 0x228   :  { %2647 = vmatpush3.bf16.msra.mxu1 %v2781_v50  ;;  %2636 = vmatprep.subr.bf16.mxu0 %v2853_v23 }
 0x229   :  { %2648 = vmatprep.subr.bf16.mxu1 %v2853_v23 }
 0x22b   :  { %2637 = vmatpush3.bf16.msra.mxu0 %v2782_v51 }
 0x22c   :  { %2649 = vmatpush3.bf16.msra.mxu1 %v2783_v52  ;;  %2638 = vmatprep.subr.bf16.mxu0 %v2853_v23 }
 0x22d   :  { %2650 = vmatprep.subr.bf16.mxu1 %v2853_v23 }
 0x22f   :  { %2639 = vmatpush3.bf16.msra.mxu0 %v2784_v53 }
 0x230   :  { %2651 = vmatpush3.bf16.msra.mxu1 %v2785_v54  ;;  %2656 = vmatprep.subr.bf16.mxu0 %v2853_v23 }
 0x231   :  { %2668 = vmatprep.subr.bf16.mxu1 %v2853_v23 }
 0x232   :  { %2641 = vmatmul.mubr.msk.bf16.vlgmr.msra.gmra.mrb[48].mxu0 %vm469_vm2, %v3165_v19 }
 0x233   :  { %2653 = vmatmul.mubr.msk.bf16.vlgmr.msra.gmra.mrb[64].mxu1 %vm469_vm2, %v3162_v18  ;;  %2657 = vmatpush3.bf16.msra.mxu0 %v2786_v55 }
 0x234   :  { %2669 = vmatpush3.bf16.msra.mxu1 %v2787_v56  ;;  %2658 = vmatprep.subr.bf16.mxu0 %v2853_v23 }
 0x235   :  { %2670 = vmatprep.subr.bf16.mxu1 %v2853_v23  ;;  %2664 = vmatprep.mubr.msk.bf16.mxu0 %vm2854_vm3, %v2853_v23 }
 0x236   :  { %2676 = vmatprep.mubr.msk.bf16.mxu1 %vm2854_vm3, %v2853_v23 }
 0x237   :  { %2659 = vmatpush3.bf16.msra.mxu0 %v2788_v57 }
 0x238   :  { %2671 = vmatpush3.bf16.msra.mxu1 %v2789_v58  ;;  %2660 = vmatprep.subr.bf16.mxu0 %v2853_v23 }
 0x239   :  { %2672 = vmatprep.subr.bf16.mxu1 %v2853_v23 }
 0x23b   :  { %2661 = vmatpush3.bf16.msra.mxu0 %v2790_v59 }
 0x23c   :  { %2673 = vmatpush3.bf16.msra.mxu1 %v2791_v60  ;;  %2662 = vmatprep.subr.bf16.mxu0 %v2853_v23 }
 0x23d   :  { %2674 = vmatprep.subr.bf16.mxu1 %v2853_v23 }
 0x23f   :  { %2663 = vmatpush3.bf16.msra.mxu0 %v2792_v61 }
 0x240   :  { %2675 = vmatpush3.bf16.msra.mxu1 %v2793_v62  ;;  %2680 = vmatprep.subr.bf16.mxu0 %v2853_v23 }
 0x242   :  { %2665 = vmatmul.mubr.msk.bf16.vlgmr.msra.gmra.mrb[52].mxu0 %vm469_vm2, %v3185_v37 }
 0x243   :  { %2677 = vmatmul.mubr.msk.bf16.vlgmr.msra.gmra.mrb[68].mxu1 %vm469_vm2, %v3182_v36  ;;  %2696 = vmatprep.mubr.msk.bf16.mxu0 %vm2854_vm3, %v2853_v23 }
 0x244   :  { %2681 = vmatpush3.bf16.msra.mxu0 %v2794_v63 }
 0x245   :  { %2682 = vmatprep.subr.bf16.mxu0 %v2853_v23 }
 0x248   :  { %2683 = vmatpush3.bf16.msra.mxu0 %v2795_v0 }
 0x249   :  { %2684 = vmatprep.subr.bf16.mxu0 %v2853_v23 }
 0x24c   :  { %2685 = vmatpush3.bf16.msra.mxu0 %v2796_v1 }
 0x24d   :  { %2686 = vmatprep.subr.bf16.mxu0 %v2853_v23 }
 0x250   :  { %2687 = vmatpush3.bf16.msra.mxu0 %v2797_v2 }
 0x251   :  { %2688 = vmatprep.subr.bf16.mxu0 %v2853_v23 }
 0x254   :  { %2689 = vmatpush3.bf16.msra.mxu0 %v2798_v3 }
 0x255   :  { %2690 = vmatprep.subr.bf16.mxu0 %v2853_v23 }
 0x258   :  { %2691 = vmatpush3.bf16.msra.mxu0 %v2799_v4 }
 0x259   :  { %2692 = vmatprep.subr.bf16.mxu0 %v2853_v23 }
 0x25c   :  { %2693 = vmatpush3.bf16.msra.mxu0 %v2800_v5 }
 0x25d   :  { %2694 = vmatprep.subr.bf16.mxu0 %v2853_v23 }
 0x260   :  { %2695 = vmatpush3.bf16.msra.mxu0 %v2801_v6 }
 0x2a5   :  { %v805_v7 = vpop.f32.mrb[24].mxu0 }
 0x2a6   :  { %v2498_v8 = vpop.f32.mrb[25].mxu0  ;;  %v873_v9 = vpop.f32.mrb[40].mxu1 }
 0x2a7   :  { %v874_v10 = vadd.f32 %v873_v9, %v805_v7  ;;  %v808_v11 = vpop.f32.mrb[26].mxu0  ;;  %v2510_v13 = vpop.f32.mrb[41].mxu1 }
 0x2a8   :  { %v2499_v14 = vpop.f32.mrb[27].mxu0  ;;  %v876_v15 = vpop.f32.mrb[42].mxu1 }
 0x2a9   :  { %v877_v17 = vadd.f32 %v876_v15, %v808_v11  ;;  %v2511_v18 = vpop.f32.mrb[43].mxu1 }
 0x2b5   :  { %v950_v19 = vpop.f32.mrb[28].mxu0 }
 0x2b6   :  { %v957_v16 = vadd.f32 %v950_v19, %v874_v10  ;;  %v2522_v20 = vpop.f32.mrb[29].mxu0  ;;  %v1029_v12 = vpop.f32.mrb[44].mxu1 }
 0x2b7   :  { %v953_v23 = vpop.f32.mrb[30].mxu0  ;;  %v2534_v21 = vpop.f32.mrb[45].mxu1 }
 0x2b8   :  { %v1036_v22 = vadd.f32 %v1029_v12, %v957_v16  ;;  %v958_v24 = vadd.f32 %v953_v23, %v877_v17  ;;  %v2523_v28 = vpop.f32.mrb[31].mxu0  ;;  %v1032_v29 = vpop.f32.mrb[46].mxu1 }
 0x2b9   :  { %v2535_v30 = vpop.f32.mrb[47].mxu1 }
 0x2ba   :  { %v1037_v31 = vadd.f32 %v1032_v29, %v958_v24 }
 0x2c5   :  { %v1108_v26 = vpop.f32.mrb[32].mxu0 }
 0x2c6   :  { %v1115_v25 = vadd.f32 %v1108_v26, %v1036_v22  ;;  %v2546_v32 = vpop.f32.mrb[33].mxu0  ;;  %v1187_v33 = vpop.f32.mrb[48].mxu1 }
 0x2c7   :  { %v1111_v34 = vpop.f32.mrb[34].mxu0  ;;  %v2558_v35 = vpop.f32.mrb[49].mxu1 }
 0x2c8   :  { %v1194_v36 = vadd.f32 %v1187_v33, %v1115_v25  ;;  %v1116_v37 = vadd.f32 %v1111_v34, %v1037_v31  ;;  %v2547_v38 = vpop.f32.mrb[35].mxu0  ;;  %v1190_v27 = vpop.f32.mrb[50].mxu1 }
 0x2c9   :  { %v2559_v39 = vpop.f32.mrb[51].mxu1 }
 0x2ca   :  { %v1195_v40 = vadd.f32 %v1190_v27, %v1116_v37 }
 0x2d5   :  { %v1266_v41 = vpop.f32.mrb[36].mxu0 }
 0x2d6   :  { %v1273_v42 = vadd.f32 %v1266_v41, %v1194_v36  ;;  %v2570_v43 = vpop.f32.mrb[37].mxu0  ;;  %v1345_v44 = vpop.f32.mrb[52].mxu1  ;;  %v2269_v36 = vld [vmem:[%s3302_s6] ss:$0 sm:$0xff]  ;;  %s2824_s6 = scalar_lea.vmem %s2124_s22, 128 }
 0x2d7   :  { %v1269_v45 = vpop.f32.mrb[38].mxu0  ;;  %v2582_v46 = vpop.f32.mrb[53].mxu1  ;;  %v2270_v41 = vld [vmem:[%s3304_s8] ss:$0 sm:$0xff]  ;;  %p2825_p8 = scmp.ne.s32.totalorder %s2124_s22, %s2824_s6  ;;  %p2830_p10 = scmp.lt.s32.totalorder %s2824_s6, %s2824_s6 }
 0x2d8   :  { %v1352_v47 = vadd.f32 %v1345_v44, %v1273_v42  ;;  %v1274_v48 = vadd.f32 %v1269_v45, %v1195_v40  ;;  %v2571_v49 = vpop.f32.mrb[39].mxu0  ;;  %v1348_v50 = vpop.f32.mrb[54].mxu1 }
 0x2d9   :  { %v2583_v51 = vpop.f32.mrb[55].mxu1  ;;  %p2831_p11 = por %p2830_p10, %p2829_p9 }
 0x2da   :  { %v1353_v52 = vadd.f32 %v1348_v50, %v1274_v48 }
 0x2db   :  { %p2832_p12 = pnand %p2831_p11, %p2825_p8 }
 0x2e5   :  { %v1424_v53 = vpop.f32.mrb[40].mxu0 }
 0x2e6   :  { %v1431_v54 = vadd.f32 %v1424_v53, %v1352_v47  ;;  %v2594_v55 = vpop.f32.mrb[41].mxu0  ;;  %v1503_v56 = vpop.f32.mrb[56].mxu1 }
 0x2e7   :  { %v1427_v57 = vpop.f32.mrb[42].mxu0  ;;  %v2606_v58 = vpop.f32.mrb[57].mxu1 }
 0x2e8   :  { %v1510_v59 = vadd.f32 %v1503_v56, %v1431_v54  ;;  %v1432_v60 = vadd.f32 %v1427_v57, %v1353_v52  ;;  %v2595_v61 = vpop.f32.mrb[43].mxu0  ;;  %v1506_v62 = vpop.f32.mrb[58].mxu1 }
 0x2e9   :  { %v2607_v63 = vpop.f32.mrb[59].mxu1 }
 0x2ea   :  { %v1511_v0 = vadd.f32 %v1506_v62, %v1432_v60 }
 0x2f5   :  { %v1582_v1 = vpop.f32.mrb[44].mxu0 }
 0x2f6   :  { %v1589_v2 = vadd.f32 %v1582_v1, %v1510_v59  ;;  %v2618_v3 = vpop.f32.mrb[45].mxu0  ;;  %v1661_v4 = vpop.f32.mrb[60].mxu1 }
 0x2f7   :  { %v1585_v5 = vpop.f32.mrb[46].mxu0  ;;  %v2630_v6 = vpop.f32.mrb[61].mxu1 }
 0x2f8   :  { %v1668_v7 = vadd.f32 %v1661_v4, %v1589_v2  ;;  %v1590_v8 = vadd.f32 %v1585_v5, %v1511_v0  ;;  %v2619_v9 = vpop.f32.mrb[47].mxu0  ;;  %v1664_v10 = vpop.f32.mrb[62].mxu1 }
 0x2f9   :  { %v2631_v11 = vpop.f32.mrb[63].mxu1 }
 0x2fa   :  { %v1669_v13 = vadd.f32 %v1664_v10, %v1590_v8 }
 0x305   :  { %v1740_v14 = vpop.f32.mrb[48].mxu0 }
 0x306   :  { %v1747_v15 = vadd.f32 %v1740_v14, %v1668_v7  ;;  %v2642_v17 = vpop.f32.mrb[49].mxu0  ;;  %v1819_v18 = vpop.f32.mrb[64].mxu1 }
 0x307   :  { %v1743_v19 = vpop.f32.mrb[50].mxu0  ;;  %v2654_v16 = vpop.f32.mrb[65].mxu1 }
 0x308   :  { %v1826_v20 = vadd.f32 %v1819_v18, %v1747_v15  ;;  %v1748_v12 = vadd.f32 %v1743_v19, %v1669_v13  ;;  %v2643_v23 = vpop.f32.mrb[51].mxu0  ;;  %v1822_v21 = vpop.f32.mrb[66].mxu1 }
 0x309   :  { %v2655_v22 = vpop.f32.mrb[67].mxu1 }
 0x30a   :  { %v1827_v24 = vadd.f32 %v1822_v21, %v1748_v12 }
 0x315   :  { %v1898_v28 = vpop.f32.mrb[52].mxu0 }
 0x316   :  { %v1905_v29 = vadd.f32 %v1898_v28, %v1826_v20  ;;  %v2666_v30 = vpop.f32.mrb[53].mxu0  ;;  %v1977_v31 = vpop.f32.mrb[68].mxu1 }
 0x317   :  { %v1901_v26 = vpop.f32.mrb[54].mxu0  ;;  %v2678_v25 = vpop.f32.mrb[69].mxu1 }
 0x318   :  { %v1984_v32 = vadd.f32 %v1977_v31, %v1905_v29  ;;  %v1906_v33 = vadd.f32 %v1901_v26, %v1827_v24  ;;  %v2667_v34 = vpop.f32.mrb[55].mxu0  ;;  %v1980_v35 = vpop.f32.mrb[70].mxu1 }
 0x319   :  { %v2679_v37 = vpop.f32.mrb[71].mxu1 }
 0x31a   :  { %v1985_v38 = vadd.f32 %v1980_v35, %v1906_v33  ;;  %v1993_v27 = vadd.f32 %v2269_v36, %v1984_v32 }
 0x31c   :  { %v1994_v39 = vadd.f32 %v2269_v36, %v1985_v38 }
 0x31e   :  { %v1995_v40 = vpack.c.bf16 %v1994_v39, %v1993_v27 }
 0x320   :  { %2697 = vmatmul.mubr.bf16.vlgmr.msra.gmra.mrb[56].mxu0 %v1995_v40 }
 0x3f3   :  { %v2101_v42 = vpop.f32.mrb[56].mxu0 }
 0x3f4   :  { %v2698_v43 = vpop.f32.mrb[57].mxu0  ;;  %v2102_v45 = vadd.f32 %v2270_v41, %v2101_v42 }
 0x3f5   :  { %v2104_v44 = vpop.f32.mrb[58].mxu0 }
 0x3f6   :  { %v2105_v46 = vadd.f32 %v2270_v41, %v2104_v44  ;;  %v2699_v47 = vpop.f32.mrb[59].mxu0 }
 0x3f8   :  { %v2286_v48 = vpack.c.bf16 %v2105_v46, %v2102_v45 }
 0x3fa   :  { %2287 = vst [vmem:[#allocation5] sm:$0xff] %v2286_v48  }
 0x3fb   :  { %2835 = shalt.err (!%p2832_p12)
}
 0x3fc   :  { %s2836_s3 = scalar_lea.hbm %s3305_s9, 128 }
 0x3fd   :  { %p2837_p13 = scmp.ne.s32.totalorder %s3305_s9, %s2836_s3  ;;  %p2840_p0 = scmp.lt.u32.totalorder %s2836_s3, %s3305_s9 }
 0x3ff   :  { %p2842_p1 = pnand %p2840_p0, %p2837_p13 }
 0x401   :  { %2845 = shalt.err (!%p2842_p1)
}
 0x402   :  { %2129 = dma.vmem_to_hbm [thread:$0]  %s2124_s22, 128, %s3305_s9, [#allocation4], %s2851_s19, %s2851_s19, %s2852_s20  }
 0x403   :  { %2848 = dma.done.wait [#allocation4], 128  }
 0x404   :  { %2849 = vsyncadd [#allocation4], 4294967168 }
 0x405   :  { %2133 = vsyncpa [#allocation3], 1 }
 0x406   :  { %2134 = vsyncpa [#allocation4], 1 }

</bundles_post_ra>
